<compile_context>
chip_gen: v6e
topology: v6e:2x2x1
jax: 0.10.0
libtpu: 0.0.40
codegen_flags: <defaults>
</compile_context>

<pallas_src>
import functools

import jax
import jax.numpy as jnp
from jax.experimental import pallas as pl
from jax.experimental.pallas import tpu as pltpu


CONFIG = dict(
    vocab_size=100,
    max_position=32,
    type_vocab_size=1,
    hidden=64,
    num_heads=4,
    intermediate=128,
    num_layers=2,
    num_labels=4,
    pad_token_id=1,
)

PAD_N = 128  # lane-dense padded width for the classifier output


# ----------------------------------------------------------------------------
# Fused encoder + classifier kernel (one grid step per batch element)
# ----------------------------------------------------------------------------

def _encoder_kernel(emb_ref, bias_ref, eg_ref, eb_ref,
                    wqkv_ref, bqkv_ref, wo_ref, bo_ref, ln1g_ref, ln1b_ref,
                    wi_ref, bi_ref, wf_ref, bf_ref, ln2g_ref, ln2b_ref,
                    clsw_ref, clsb_ref, o_ref,
                    *, num_layers, num_heads, head_dim, scale, eps):
    """Whole forward for one batch element; everything stays in VMEM/vregs.

    emb_ref : (1, S, H)   summed embeddings (word + pos + type)
    bias_ref: (1, 1, S)   additive key-position mask bias
    o_ref   : (1, S, 128) lane-dense padded logits
    Weight refs carry a leading layer axis and are indexed with static ints.
    """
    H = num_heads * head_dim

    def layernorm(x, g, b):
        mu = jnp.mean(x, axis=-1, keepdims=True)
        xc = x - mu
        var = jnp.mean(xc * xc, axis=-1, keepdims=True)
        return xc * jax.lax.rsqrt(var + eps) * g + b

    # Embedding LayerNorm (no residual); dropout(p=0.1) = identity in eval.
    x = layernorm(emb_ref[0], eg_ref[...], eb_ref[...])          # (S, H)
    bias = bias_ref[0]                                           # (1, S)

    for l in range(num_layers):                                  # static unroll
        # --- self-attention: fused QKV projection ---
        qkv = jnp.dot(x, wqkv_ref[l],
                      preferred_element_type=jnp.float32) + bqkv_ref[l]  # (S, 3H)
        q = qkv[:, 0 * H:1 * H]
        k = qkv[:, 1 * H:2 * H]
        v = qkv[:, 2 * H:3 * H]

        ctx_heads = []
        for h in range(num_heads):                               # static unroll
            lo, hi = h * head_dim, (h + 1) * head_dim
            qh, kh, vh = q[:, lo:hi], k[:, lo:hi], v[:, lo:hi]   # (S, dh)
            s = jax.lax.dot_general(qh, kh, (((1,), (1,)), ((), ())),
                                    preferred_element_type=jnp.float32)  # (S, S)
            s = s * scale + bias
            m = jnp.max(s, axis=-1, keepdims=True)
            p = jnp.exp(s - m)
            denom = jnp.sum(p, axis=-1, keepdims=True)
            ctx_h = jnp.dot(p, vh, preferred_element_type=jnp.float32)
            ctx_heads.append(ctx_h * pl.reciprocal(denom, approx=True))
        ctx = jnp.concatenate(ctx_heads, axis=-1)                # (S, H)

        attn_out = jnp.dot(ctx, wo_ref[l],
                           preferred_element_type=jnp.float32) + bo_ref[l]
        x = layernorm(attn_out + x, ln1g_ref[l], ln1b_ref[l])

        # --- feed-forward ---
        inter = jnp.dot(x, wi_ref[l],
                        preferred_element_type=jnp.float32) + bi_ref[l]  # (S, I)
        # TODO(synk): roberta-base uses exact (erf) GELU; tanh approx used here.
        inter = jax.nn.gelu(inter, approximate=True)
        ff = jnp.dot(inter, wf_ref[l],
                     preferred_element_type=jnp.float32) + bf_ref[l]
        x = layernorm(ff + x, ln2g_ref[l], ln2b_ref[l])

    # --- classifier head (dropout = identity in eval); lane-dense padded out ---
    o_ref[0] = jnp.dot(x, clsw_ref[...],
                       preferred_element_type=jnp.float32) + clsb_ref[...]


# ----------------------------------------------------------------------------
# Parameter initialization (deterministic synthetic weights, stacked per layer)
# ----------------------------------------------------------------------------

def init_params(key, cfg):
    H, I, L = cfg["hidden"], cfg["intermediate"], cfg["num_layers"]
    NL = cfg["num_labels"]
    std = 0.02
    k = jax.random.split(key, 8)
    n = lambda kk, shape: std * jax.random.normal(kk, shape, jnp.float32)

    cls_w = n(k[7], (H, NL))
    return {
        "word_emb": n(k[0], (cfg["vocab_size"], H)),
        "pos_emb": n(k[1], (cfg["max_position"], H)),
        "type_emb": n(k[2], (cfg["type_vocab_size"], H)),
        "emb_ln_g": jnp.ones((1, H), jnp.float32),
        "emb_ln_b": jnp.zeros((1, H), jnp.float32),
        # fused Q|K|V projection
        "wqkv": n(k[3], (L, H, 3 * H)),
        "bqkv": jnp.zeros((L, 1, 3 * H), jnp.float32),
        "wo": n(k[4], (L, H, H)),
        "bo": jnp.zeros((L, 1, H), jnp.float32),
        "ln1_g": jnp.ones((L, 1, H), jnp.float32),
        "ln1_b": jnp.zeros((L, 1, H), jnp.float32),
        "wi": n(k[5], (L, H, I)),
        "bi": jnp.zeros((L, 1, I), jnp.float32),
        "wf": n(k[6], (L, I, H)),
        "bf": jnp.zeros((L, 1, H), jnp.float32),
        "ln2_g": jnp.ones((L, 1, H), jnp.float32),
        "ln2_b": jnp.zeros((L, 1, H), jnp.float32),
        # classifier padded to 128 lanes for unmasked vector stores
        "cls_w_pad": jnp.pad(cls_w, ((0, 0), (0, PAD_N - NL))),
        "cls_b_pad": jnp.zeros((1, PAD_N), jnp.float32),
    }


# ----------------------------------------------------------------------------
# Forward pass: embedding gathers in JAX glue, everything else in one kernel
# ----------------------------------------------------------------------------

def baseline_model_forward(params, input_ids, attention_mask, cfg=CONFIG):
    B, S = input_ids.shape
    H = cfg["hidden"]
    I = cfg["intermediate"]
    L = cfg["num_layers"]
    nh = cfg["num_heads"]
    dh = H // nh
    scale = 1.0 / (dh ** 0.5)

    mask_f = attention_mask.astype(jnp.float32)

    # RoBERTa position ids: cumsum of mask offset by padding_idx.
    pos_ids = (jnp.cumsum(attention_mask, axis=1) * attention_mask
               + cfg["pad_token_id"]).astype(jnp.int32)
    emb = (jnp.take(params["word_emb"], input_ids, axis=0)
           + jnp.take(params["pos_emb"], pos_ids, axis=0)
           + params["type_emb"][0][None, None, :])                # (B, S, H)

    # Additive key-position bias, kept tiny; broadcast inside the kernel.
    bias = ((1.0 - mask_f) * -10000.0).reshape(B, 1, S)

    kernel = functools.partial(_encoder_kernel, num_layers=L, num_heads=nh,
                               head_dim=dh, scale=scale, eps=1e-5)

    full = lambda shape: pl.BlockSpec(shape, lambda b: (0,) * len(shape))
    per_batch = lambda shape: pl.BlockSpec(shape, lambda b: (b, 0, 0))

    logits_pad = pl.pallas_call(
        kernel,
        out_shape=jax.ShapeDtypeStruct((B, S, PAD_N), jnp.float32),
        grid=(B,),
        in_specs=[
            per_batch((1, S, H)),                       # emb
            per_batch((1, 1, S)),                       # mask bias
            full((1, H)), full((1, H)),                 # emb LayerNorm
            full((L, H, 3 * H)), full((L, 1, 3 * H)),   # wqkv, bqkv
            full((L, H, H)), full((L, 1, H)),           # wo, bo
            full((L, 1, H)), full((L, 1, H)),           # ln1 g, b
            full((L, H, I)), full((L, 1, I)),           # wi, bi
            full((L, I, H)), full((L, 1, H)),           # wf, bf
            full((L, 1, H)), full((L, 1, H)),           # ln2 g, b
            full((H, PAD_N)), full((1, PAD_N)),         # classifier (padded)
        ],
        out_specs=pl.BlockSpec((1, S, PAD_N), lambda b: (b, 0, 0)),
        compiler_params=pltpu.CompilerParams(
            dimension_semantics=("parallel",)),
    )(emb, bias,
      params["emb_ln_g"], params["emb_ln_b"],
      params["wqkv"], params["bqkv"], params["wo"], params["bo"],
      params["ln1_g"], params["ln1_b"],
      params["wi"], params["bi"], params["wf"], params["bf"],
      params["ln2_g"], params["ln2_b"],
      params["cls_w_pad"], params["cls_b_pad"])

    return logits_pad[:, :, :cfg["num_labels"]]


# ----------------------------------------------------------------------------
# Main
# ----------------------------------------------------------------------------

if __name__ == "__main__":
    key = jax.random.PRNGKey(0)
    pkey, dkey = jax.random.split(key)

    params = init_params(pkey, CONFIG)

    B, S = 2, 8
    input_ids = jax.random.randint(dkey, (B, S), minval=3,
                                   maxval=CONFIG["vocab_size"], dtype=jnp.int32)
    attention_mask = jnp.ones((B, S), jnp.int32)
    # make the last two tokens of batch 1 padding, to exercise the mask path
    attention_mask = attention_mask.at[1, 6:].set(0)
    input_ids = input_ids.at[1, 6:].set(CONFIG["pad_token_id"])

    forward = jax.jit(baseline_model_forward)
    logits = forward(params, input_ids, attention_mask)
    logits = jax.block_until_ready(logits)

    assert logits.shape == (B, S, CONFIG["num_labels"])
    assert logits.dtype == jnp.float32
    assert bool(jnp.all(jnp.isfinite(logits)))
    print("KERNEL_OK")
</pallas_src>

<mosaic_0001>
module attributes {stable_mosaic.version = 11 : i64} {
  func.func @_encoder_kernel(%arg0: i32, %arg1: memref<1x8x64xf32, #tpu.memory_space<vmem>>, %arg2: memref<1x1x8xf32, #tpu.memory_space<vmem>>, %arg3: memref<1x64xf32, #tpu.memory_space<vmem>>, %arg4: memref<1x64xf32, #tpu.memory_space<vmem>>, %arg5: memref<2x64x192xf32, #tpu.memory_space<vmem>>, %arg6: memref<2x1x192xf32, #tpu.memory_space<vmem>>, %arg7: memref<2x64x64xf32, #tpu.memory_space<vmem>>, %arg8: memref<2x1x64xf32, #tpu.memory_space<vmem>>, %arg9: memref<2x1x64xf32, #tpu.memory_space<vmem>>, %arg10: memref<2x1x64xf32, #tpu.memory_space<vmem>>, %arg11: memref<2x64x128xf32, #tpu.memory_space<vmem>>, %arg12: memref<2x1x128xf32, #tpu.memory_space<vmem>>, %arg13: memref<2x128x64xf32, #tpu.memory_space<vmem>>, %arg14: memref<2x1x64xf32, #tpu.memory_space<vmem>>, %arg15: memref<2x1x64xf32, #tpu.memory_space<vmem>>, %arg16: memref<2x1x64xf32, #tpu.memory_space<vmem>>, %arg17: memref<64x128xf32, #tpu.memory_space<vmem>>, %arg18: memref<1x128xf32, #tpu.memory_space<vmem>>, %arg19: memref<1x8x128xf32, #tpu.memory_space<vmem>>) attributes {dimension_semantics = [#tpu.dimension_semantics<parallel>], iteration_bounds = array<i64: 2>, scalar_prefetch = 0 : i64, scratch_operands = 0 : i64, tpu.core_type = #tpu.core_type<tc>, window_params = [{transform_indices = @transform_0, window_bounds = array<i64: 1, 8, 64>}, {transform_indices = @transform_1, window_bounds = array<i64: 1, 1, 8>}, {pipeline_mode = #tpu.pipeline_mode<synchronous>, transform_indices = @transform_2, window_bounds = array<i64: 1, 64>}, {pipeline_mode = #tpu.pipeline_mode<synchronous>, transform_indices = @transform_3, window_bounds = array<i64: 1, 64>}, {pipeline_mode = #tpu.pipeline_mode<synchronous>, transform_indices = @transform_4, window_bounds = array<i64: 2, 64, 192>}, {pipeline_mode = #tpu.pipeline_mode<synchronous>, transform_indices = @transform_5, window_bounds = array<i64: 2, 1, 192>}, {pipeline_mode = #tpu.pipeline_mode<synchronous>, transform_indices = @transform_6, window_bounds = array<i64: 2, 64, 64>}, {pipeline_mode = #tpu.pipeline_mode<synchronous>, transform_indices = @transform_7, window_bounds = array<i64: 2, 1, 64>}, {pipeline_mode = #tpu.pipeline_mode<synchronous>, transform_indices = @transform_8, window_bounds = array<i64: 2, 1, 64>}, {pipeline_mode = #tpu.pipeline_mode<synchronous>, transform_indices = @transform_9, window_bounds = array<i64: 2, 1, 64>}, {pipeline_mode = #tpu.pipeline_mode<synchronous>, transform_indices = @transform_10, window_bounds = array<i64: 2, 64, 128>}, {pipeline_mode = #tpu.pipeline_mode<synchronous>, transform_indices = @transform_11, window_bounds = array<i64: 2, 1, 128>}, {pipeline_mode = #tpu.pipeline_mode<synchronous>, transform_indices = @transform_12, window_bounds = array<i64: 2, 128, 64>}, {pipeline_mode = #tpu.pipeline_mode<synchronous>, transform_indices = @transform_13, window_bounds = array<i64: 2, 1, 64>}, {pipeline_mode = #tpu.pipeline_mode<synchronous>, transform_indices = @transform_14, window_bounds = array<i64: 2, 1, 64>}, {pipeline_mode = #tpu.pipeline_mode<synchronous>, transform_indices = @transform_15, window_bounds = array<i64: 2, 1, 64>}, {pipeline_mode = #tpu.pipeline_mode<synchronous>, transform_indices = @transform_16, window_bounds = array<i64: 64, 128>}, {pipeline_mode = #tpu.pipeline_mode<synchronous>, transform_indices = @transform_17, window_bounds = array<i64: 1, 128>}, {transform_indices = @transform_18, window_bounds = array<i64: 1, 8, 128>}]} {
    %c0 = arith.constant 0 : index
    %c0_0 = arith.constant 0 : index
    %c0_1 = arith.constant 0 : index
    %0 = vector.load %arg1[%c0, %c0_0, %c0_1] : memref<1x8x64xf32, #tpu.memory_space<vmem>>, vector<1x8x64xf32>
    %1 = vector.shape_cast %0 : vector<1x8x64xf32> to vector<8x64xf32>
    %c0_2 = arith.constant 0 : index
    %c0_3 = arith.constant 0 : index
    %2 = vector.load %arg3[%c0_2, %c0_3] : memref<1x64xf32, #tpu.memory_space<vmem>>, vector<1x64xf32>
    %c0_4 = arith.constant 0 : index
    %c0_5 = arith.constant 0 : index
    %3 = vector.load %arg4[%c0_4, %c0_5] : memref<1x64xf32, #tpu.memory_space<vmem>>, vector<1x64xf32>
    %cst = arith.constant dense<0.000000e+00> : vector<8xf32>
    %4 = vector.multi_reduction <add>, %1, %cst [1] : vector<8x64xf32> to vector<8xf32>
    %5 = vector.shape_cast %4 : vector<8xf32> to vector<8x1xf32>
    %cst_6 = arith.constant 6.400000e+01 : f32
    %6 = vector.broadcast %cst_6 : f32 to vector<8x1xf32>
    %7 = arith.divf %5, %6 : vector<8x1xf32>
    %8 = vector.broadcast %7 : vector<8x1xf32> to vector<8x64xf32>
    %9 = arith.subf %1, %8 : vector<8x64xf32>
    %10 = arith.mulf %9, %9 : vector<8x64xf32>
    %cst_7 = arith.constant dense<0.000000e+00> : vector<8xf32>
    %11 = vector.multi_reduction <add>, %10, %cst_7 [1] : vector<8x64xf32> to vector<8xf32>
    %12 = vector.shape_cast %11 : vector<8xf32> to vector<8x1xf32>
    %cst_8 = arith.constant 6.400000e+01 : f32
    %13 = vector.broadcast %cst_8 : f32 to vector<8x1xf32>
    %14 = arith.divf %12, %13 : vector<8x1xf32>
    %cst_9 = arith.constant 9.99999974E-6 : f32
    %15 = vector.broadcast %cst_9 : f32 to vector<8x1xf32>
    %16 = arith.addf %14, %15 : vector<8x1xf32>
    %17 = math.rsqrt %16 : vector<8x1xf32>
    %18 = vector.broadcast %17 : vector<8x1xf32> to vector<8x64xf32>
    %19 = arith.mulf %9, %18 : vector<8x64xf32>
    %20 = vector.broadcast %2 : vector<1x64xf32> to vector<8x64xf32>
    %21 = arith.mulf %19, %20 : vector<8x64xf32>
    %22 = vector.broadcast %3 : vector<1x64xf32> to vector<8x64xf32>
    %23 = arith.addf %21, %22 : vector<8x64xf32>
    %c0_10 = arith.constant 0 : index
    %c0_11 = arith.constant 0 : index
    %c0_12 = arith.constant 0 : index
    %24 = vector.load %arg2[%c0_10, %c0_11, %c0_12] : memref<1x1x8xf32, #tpu.memory_space<vmem>>, vector<1x1x8xf32>
    %25 = vector.shape_cast %24 : vector<1x1x8xf32> to vector<1x8xf32>
    %c0_13 = arith.constant 0 : index
    %c0_14 = arith.constant 0 : index
    %c0_15 = arith.constant 0 : index
    %26 = vector.load %arg5[%c0_13, %c0_14, %c0_15] : memref<2x64x192xf32, #tpu.memory_space<vmem>>, vector<1x64x192xf32>
    %27 = vector.shape_cast %26 : vector<1x64x192xf32> to vector<64x192xf32>
    %cst_16 = arith.constant dense<0.000000e+00> : vector<8x192xf32>
    %28 = tpu.matmul %23, %27, %cst_16 {dimension_numbers = #tpu.dot_dimension_numbers<[1], [0], [0], [1], [0, 0, 1, 1], [], []>} : vector<8x64xf32>, vector<64x192xf32>, vector<8x192xf32> -> vector<8x192xf32>
    %c0_17 = arith.constant 0 : index
    %c0_18 = arith.constant 0 : index
    %c0_19 = arith.constant 0 : index
    %29 = vector.load %arg6[%c0_17, %c0_18, %c0_19] : memref<2x1x192xf32, #tpu.memory_space<vmem>>, vector<1x1x192xf32>
    %30 = vector.shape_cast %29 : vector<1x1x192xf32> to vector<1x192xf32>
    %31 = vector.broadcast %30 : vector<1x192xf32> to vector<8x192xf32>
    %32 = arith.addf %28, %31 : vector<8x192xf32>
    %33 = vector.extract_strided_slice %32 {offsets = [0, 0], sizes = [8, 64], strides = [1, 1]} : vector<8x192xf32> to vector<8x64xf32>
    %34 = vector.extract_strided_slice %32 {offsets = [0, 64], sizes = [8, 64], strides = [1, 1]} : vector<8x192xf32> to vector<8x64xf32>
    %35 = vector.extract_strided_slice %32 {offsets = [0, 128], sizes = [8, 64], strides = [1, 1]} : vector<8x192xf32> to vector<8x64xf32>
    %36 = vector.extract_strided_slice %33 {offsets = [0, 0], sizes = [8, 16], strides = [1, 1]} : vector<8x64xf32> to vector<8x16xf32>
    %37 = vector.extract_strided_slice %34 {offsets = [0, 0], sizes = [8, 16], strides = [1, 1]} : vector<8x64xf32> to vector<8x16xf32>
    %38 = vector.extract_strided_slice %35 {offsets = [0, 0], sizes = [8, 16], strides = [1, 1]} : vector<8x64xf32> to vector<8x16xf32>
    %cst_20 = arith.constant dense<0.000000e+00> : vector<8x8xf32>
    %39 = tpu.matmul %36, %37, %cst_20 {dimension_numbers = #tpu.dot_dimension_numbers<[1], [1], [0], [0], [0, 0, 1, 0], [], []>} : vector<8x16xf32>, vector<8x16xf32>, vector<8x8xf32> -> vector<8x8xf32>
    %cst_21 = arith.constant 2.500000e-01 : f32
    %40 = vector.broadcast %cst_21 : f32 to vector<8x8xf32>
    %41 = arith.mulf %39, %40 : vector<8x8xf32>
    %42 = vector.broadcast %25 : vector<1x8xf32> to vector<8x8xf32>
    %43 = arith.addf %41, %42 : vector<8x8xf32>
    %cst_22 = arith.constant dense<0xFF800000> : vector<8xf32>
    %44 = vector.multi_reduction <maximumf>, %43, %cst_22 [1] : vector<8x8xf32> to vector<8xf32>
    %45 = vector.shape_cast %44 : vector<8xf32> to vector<8x1xf32>
    %46 = vector.broadcast %45 : vector<8x1xf32> to vector<8x8xf32>
    %47 = arith.subf %43, %46 : vector<8x8xf32>
    %48 = math.exp %47 : vector<8x8xf32>
    %cst_23 = arith.constant dense<0.000000e+00> : vector<8xf32>
    %49 = vector.multi_reduction <add>, %48, %cst_23 [1] : vector<8x8xf32> to vector<8xf32>
    %50 = vector.shape_cast %49 : vector<8xf32> to vector<8x1xf32>
    %cst_24 = arith.constant dense<0.000000e+00> : vector<8x16xf32>
    %51 = tpu.matmul %48, %38, %cst_24 {dimension_numbers = #tpu.dot_dimension_numbers<[1], [0], [0], [1], [0, 0, 1, 1], [], []>} : vector<8x8xf32>, vector<8x16xf32>, vector<8x16xf32> -> vector<8x16xf32>
    %52 = tpu.reciprocal %50 {approx = true} : vector<8x1xf32> -> vector<8x1xf32>
    %53 = vector.broadcast %52 : vector<8x1xf32> to vector<8x16xf32>
    %54 = arith.mulf %51, %53 : vector<8x16xf32>
    %55 = vector.extract_strided_slice %33 {offsets = [0, 16], sizes = [8, 16], strides = [1, 1]} : vector<8x64xf32> to vector<8x16xf32>
    %56 = vector.extract_strided_slice %34 {offsets = [0, 16], sizes = [8, 16], strides = [1, 1]} : vector<8x64xf32> to vector<8x16xf32>
    %57 = vector.extract_strided_slice %35 {offsets = [0, 16], sizes = [8, 16], strides = [1, 1]} : vector<8x64xf32> to vector<8x16xf32>
    %cst_25 = arith.constant dense<0.000000e+00> : vector<8x8xf32>
    %58 = tpu.matmul %55, %56, %cst_25 {dimension_numbers = #tpu.dot_dimension_numbers<[1], [1], [0], [0], [0, 0, 1, 0], [], []>} : vector<8x16xf32>, vector<8x16xf32>, vector<8x8xf32> -> vector<8x8xf32>
    %cst_26 = arith.constant 2.500000e-01 : f32
    %59 = vector.broadcast %cst_26 : f32 to vector<8x8xf32>
    %60 = arith.mulf %58, %59 : vector<8x8xf32>
    %61 = vector.broadcast %25 : vector<1x8xf32> to vector<8x8xf32>
    %62 = arith.addf %60, %61 : vector<8x8xf32>
    %cst_27 = arith.constant dense<0xFF800000> : vector<8xf32>
    %63 = vector.multi_reduction <maximumf>, %62, %cst_27 [1] : vector<8x8xf32> to vector<8xf32>
    %64 = vector.shape_cast %63 : vector<8xf32> to vector<8x1xf32>
    %65 = vector.broadcast %64 : vector<8x1xf32> to vector<8x8xf32>
    %66 = arith.subf %62, %65 : vector<8x8xf32>
    %67 = math.exp %66 : vector<8x8xf32>
    %cst_28 = arith.constant dense<0.000000e+00> : vector<8xf32>
    %68 = vector.multi_reduction <add>, %67, %cst_28 [1] : vector<8x8xf32> to vector<8xf32>
    %69 = vector.shape_cast %68 : vector<8xf32> to vector<8x1xf32>
    %cst_29 = arith.constant dense<0.000000e+00> : vector<8x16xf32>
    %70 = tpu.matmul %67, %57, %cst_29 {dimension_numbers = #tpu.dot_dimension_numbers<[1], [0], [0], [1], [0, 0, 1, 1], [], []>} : vector<8x8xf32>, vector<8x16xf32>, vector<8x16xf32> -> vector<8x16xf32>
    %71 = tpu.reciprocal %69 {approx = true} : vector<8x1xf32> -> vector<8x1xf32>
    %72 = vector.broadcast %71 : vector<8x1xf32> to vector<8x16xf32>
    %73 = arith.mulf %70, %72 : vector<8x16xf32>
    %74 = vector.extract_strided_slice %33 {offsets = [0, 32], sizes = [8, 16], strides = [1, 1]} : vector<8x64xf32> to vector<8x16xf32>
    %75 = vector.extract_strided_slice %34 {offsets = [0, 32], sizes = [8, 16], strides = [1, 1]} : vector<8x64xf32> to vector<8x16xf32>
    %76 = vector.extract_strided_slice %35 {offsets = [0, 32], sizes = [8, 16], strides = [1, 1]} : vector<8x64xf32> to vector<8x16xf32>
    %cst_30 = arith.constant dense<0.000000e+00> : vector<8x8xf32>
    %77 = tpu.matmul %74, %75, %cst_30 {dimension_numbers = #tpu.dot_dimension_numbers<[1], [1], [0], [0], [0, 0, 1, 0], [], []>} : vector<8x16xf32>, vector<8x16xf32>, vector<8x8xf32> -> vector<8x8xf32>
    %cst_31 = arith.constant 2.500000e-01 : f32
    %78 = vector.broadcast %cst_31 : f32 to vector<8x8xf32>
    %79 = arith.mulf %77, %78 : vector<8x8xf32>
    %80 = vector.broadcast %25 : vector<1x8xf32> to vector<8x8xf32>
    %81 = arith.addf %79, %80 : vector<8x8xf32>
    %cst_32 = arith.constant dense<0xFF800000> : vector<8xf32>
    %82 = vector.multi_reduction <maximumf>, %81, %cst_32 [1] : vector<8x8xf32> to vector<8xf32>
    %83 = vector.shape_cast %82 : vector<8xf32> to vector<8x1xf32>
    %84 = vector.broadcast %83 : vector<8x1xf32> to vector<8x8xf32>
    %85 = arith.subf %81, %84 : vector<8x8xf32>
    %86 = math.exp %85 : vector<8x8xf32>
    %cst_33 = arith.constant dense<0.000000e+00> : vector<8xf32>
    %87 = vector.multi_reduction <add>, %86, %cst_33 [1] : vector<8x8xf32> to vector<8xf32>
    %88 = vector.shape_cast %87 : vector<8xf32> to vector<8x1xf32>
    %cst_34 = arith.constant dense<0.000000e+00> : vector<8x16xf32>
    %89 = tpu.matmul %86, %76, %cst_34 {dimension_numbers = #tpu.dot_dimension_numbers<[1], [0], [0], [1], [0, 0, 1, 1], [], []>} : vector<8x8xf32>, vector<8x16xf32>, vector<8x16xf32> -> vector<8x16xf32>
    %90 = tpu.reciprocal %88 {approx = true} : vector<8x1xf32> -> vector<8x1xf32>
    %91 = vector.broadcast %90 : vector<8x1xf32> to vector<8x16xf32>
    %92 = arith.mulf %89, %91 : vector<8x16xf32>
    %93 = vector.extract_strided_slice %33 {offsets = [0, 48], sizes = [8, 16], strides = [1, 1]} : vector<8x64xf32> to vector<8x16xf32>
    %94 = vector.extract_strided_slice %34 {offsets = [0, 48], sizes = [8, 16], strides = [1, 1]} : vector<8x64xf32> to vector<8x16xf32>
    %95 = vector.extract_strided_slice %35 {offsets = [0, 48], sizes = [8, 16], strides = [1, 1]} : vector<8x64xf32> to vector<8x16xf32>
    %cst_35 = arith.constant dense<0.000000e+00> : vector<8x8xf32>
    %96 = tpu.matmul %93, %94, %cst_35 {dimension_numbers = #tpu.dot_dimension_numbers<[1], [1], [0], [0], [0, 0, 1, 0], [], []>} : vector<8x16xf32>, vector<8x16xf32>, vector<8x8xf32> -> vector<8x8xf32>
    %cst_36 = arith.constant 2.500000e-01 : f32
    %97 = vector.broadcast %cst_36 : f32 to vector<8x8xf32>
    %98 = arith.mulf %96, %97 : vector<8x8xf32>
    %99 = vector.broadcast %25 : vector<1x8xf32> to vector<8x8xf32>
    %100 = arith.addf %98, %99 : vector<8x8xf32>
    %cst_37 = arith.constant dense<0xFF800000> : vector<8xf32>
    %101 = vector.multi_reduction <maximumf>, %100, %cst_37 [1] : vector<8x8xf32> to vector<8xf32>
    %102 = vector.shape_cast %101 : vector<8xf32> to vector<8x1xf32>
    %103 = vector.broadcast %102 : vector<8x1xf32> to vector<8x8xf32>
    %104 = arith.subf %100, %103 : vector<8x8xf32>
    %105 = math.exp %104 : vector<8x8xf32>
    %cst_38 = arith.constant dense<0.000000e+00> : vector<8xf32>
    %106 = vector.multi_reduction <add>, %105, %cst_38 [1] : vector<8x8xf32> to vector<8xf32>
    %107 = vector.shape_cast %106 : vector<8xf32> to vector<8x1xf32>
    %cst_39 = arith.constant dense<0.000000e+00> : vector<8x16xf32>
    %108 = tpu.matmul %105, %95, %cst_39 {dimension_numbers = #tpu.dot_dimension_numbers<[1], [0], [0], [1], [0, 0, 1, 1], [], []>} : vector<8x8xf32>, vector<8x16xf32>, vector<8x16xf32> -> vector<8x16xf32>
    %109 = tpu.reciprocal %107 {approx = true} : vector<8x1xf32> -> vector<8x1xf32>
    %110 = vector.broadcast %109 : vector<8x1xf32> to vector<8x16xf32>
    %111 = arith.mulf %108, %110 : vector<8x16xf32>
    %112 = tpu.concatenate %54, %73, %92, %111 in 1 : vector<8x16xf32>, vector<8x16xf32>, vector<8x16xf32>, vector<8x16xf32> -> vector<8x64xf32>
    %c0_40 = arith.constant 0 : index
    %c0_41 = arith.constant 0 : index
    %c0_42 = arith.constant 0 : index
    %113 = vector.load %arg7[%c0_40, %c0_41, %c0_42] : memref<2x64x64xf32, #tpu.memory_space<vmem>>, vector<1x64x64xf32>
    %114 = vector.shape_cast %113 : vector<1x64x64xf32> to vector<64x64xf32>
    %cst_43 = arith.constant dense<0.000000e+00> : vector<8x64xf32>
    %115 = tpu.matmul %112, %114, %cst_43 {dimension_numbers = #tpu.dot_dimension_numbers<[1], [0], [0], [1], [0, 0, 1, 1], [], []>} : vector<8x64xf32>, vector<64x64xf32>, vector<8x64xf32> -> vector<8x64xf32>
    %c0_44 = arith.constant 0 : index
    %c0_45 = arith.constant 0 : index
    %c0_46 = arith.constant 0 : index
    %116 = vector.load %arg8[%c0_44, %c0_45, %c0_46] : memref<2x1x64xf32, #tpu.memory_space<vmem>>, vector<1x1x64xf32>
    %117 = vector.shape_cast %116 : vector<1x1x64xf32> to vector<1x64xf32>
    %118 = vector.broadcast %117 : vector<1x64xf32> to vector<8x64xf32>
    %119 = arith.addf %115, %118 : vector<8x64xf32>
    %120 = arith.addf %119, %23 : vector<8x64xf32>
    %c0_47 = arith.constant 0 : index
    %c0_48 = arith.constant 0 : index
    %c0_49 = arith.constant 0 : index
    %121 = vector.load %arg9[%c0_47, %c0_48, %c0_49] : memref<2x1x64xf32, #tpu.memory_space<vmem>>, vector<1x1x64xf32>
    %122 = vector.shape_cast %121 : vector<1x1x64xf32> to vector<1x64xf32>
    %c0_50 = arith.constant 0 : index
    %c0_51 = arith.constant 0 : index
    %c0_52 = arith.constant 0 : index
    %123 = vector.load %arg10[%c0_50, %c0_51, %c0_52] : memref<2x1x64xf32, #tpu.memory_space<vmem>>, vector<1x1x64xf32>
    %124 = vector.shape_cast %123 : vector<1x1x64xf32> to vector<1x64xf32>
    %cst_53 = arith.constant dense<0.000000e+00> : vector<8xf32>
    %125 = vector.multi_reduction <add>, %120, %cst_53 [1] : vector<8x64xf32> to vector<8xf32>
    %126 = vector.shape_cast %125 : vector<8xf32> to vector<8x1xf32>
    %cst_54 = arith.constant 6.400000e+01 : f32
    %127 = vector.broadcast %cst_54 : f32 to vector<8x1xf32>
    %128 = arith.divf %126, %127 : vector<8x1xf32>
    %129 = vector.broadcast %128 : vector<8x1xf32> to vector<8x64xf32>
    %130 = arith.subf %120, %129 : vector<8x64xf32>
    %131 = arith.mulf %130, %130 : vector<8x64xf32>
    %cst_55 = arith.constant dense<0.000000e+00> : vector<8xf32>
    %132 = vector.multi_reduction <add>, %131, %cst_55 [1] : vector<8x64xf32> to vector<8xf32>
    %133 = vector.shape_cast %132 : vector<8xf32> to vector<8x1xf32>
    %cst_56 = arith.constant 6.400000e+01 : f32
    %134 = vector.broadcast %cst_56 : f32 to vector<8x1xf32>
    %135 = arith.divf %133, %134 : vector<8x1xf32>
    %cst_57 = arith.constant 9.99999974E-6 : f32
    %136 = vector.broadcast %cst_57 : f32 to vector<8x1xf32>
    %137 = arith.addf %135, %136 : vector<8x1xf32>
    %138 = math.rsqrt %137 : vector<8x1xf32>
    %139 = vector.broadcast %138 : vector<8x1xf32> to vector<8x64xf32>
    %140 = arith.mulf %130, %139 : vector<8x64xf32>
    %141 = vector.broadcast %122 : vector<1x64xf32> to vector<8x64xf32>
    %142 = arith.mulf %140, %141 : vector<8x64xf32>
    %143 = vector.broadcast %124 : vector<1x64xf32> to vector<8x64xf32>
    %144 = arith.addf %142, %143 : vector<8x64xf32>
    %c0_58 = arith.constant 0 : index
    %c0_59 = arith.constant 0 : index
    %c0_60 = arith.constant 0 : index
    %145 = vector.load %arg11[%c0_58, %c0_59, %c0_60] : memref<2x64x128xf32, #tpu.memory_space<vmem>>, vector<1x64x128xf32>
    %146 = vector.shape_cast %145 : vector<1x64x128xf32> to vector<64x128xf32>
    %cst_61 = arith.constant dense<0.000000e+00> : vector<8x128xf32>
    %147 = tpu.matmul %144, %146, %cst_61 {dimension_numbers = #tpu.dot_dimension_numbers<[1], [0], [0], [1], [0, 0, 1, 1], [], []>} : vector<8x64xf32>, vector<64x128xf32>, vector<8x128xf32> -> vector<8x128xf32>
    %c0_62 = arith.constant 0 : index
    %c0_63 = arith.constant 0 : index
    %c0_64 = arith.constant 0 : index
    %148 = vector.load %arg12[%c0_62, %c0_63, %c0_64] : memref<2x1x128xf32, #tpu.memory_space<vmem>>, vector<1x1x128xf32>
    %149 = vector.shape_cast %148 : vector<1x1x128xf32> to vector<1x128xf32>
    %150 = vector.broadcast %149 : vector<1x128xf32> to vector<8x128xf32>
    %151 = arith.addf %147, %150 : vector<8x128xf32>
    %152 = arith.mulf %151, %151 : vector<8x128xf32>
    %153 = arith.mulf %151, %152 : vector<8x128xf32>
    %cst_65 = arith.constant 4.471500e-02 : f32
    %154 = vector.broadcast %cst_65 : f32 to vector<8x128xf32>
    %155 = arith.mulf %154, %153 : vector<8x128xf32>
    %156 = arith.addf %151, %155 : vector<8x128xf32>
    %cst_66 = arith.constant 0.797884583 : f32
    %157 = vector.broadcast %cst_66 : f32 to vector<8x128xf32>
    %158 = arith.mulf %157, %156 : vector<8x128xf32>
    %159 = math.tanh %158 : vector<8x128xf32>
    %cst_67 = arith.constant 1.000000e+00 : f32
    %160 = vector.broadcast %cst_67 : f32 to vector<8x128xf32>
    %161 = arith.addf %160, %159 : vector<8x128xf32>
    %cst_68 = arith.constant 5.000000e-01 : f32
    %162 = vector.broadcast %cst_68 : f32 to vector<8x128xf32>
    %163 = arith.mulf %162, %161 : vector<8x128xf32>
    %164 = arith.mulf %151, %163 : vector<8x128xf32>
    %c0_69 = arith.constant 0 : index
    %c0_70 = arith.constant 0 : index
    %c0_71 = arith.constant 0 : index
    %165 = vector.load %arg13[%c0_69, %c0_70, %c0_71] : memref<2x128x64xf32, #tpu.memory_space<vmem>>, vector<1x128x64xf32>
    %166 = vector.shape_cast %165 : vector<1x128x64xf32> to vector<128x64xf32>
    %cst_72 = arith.constant dense<0.000000e+00> : vector<8x64xf32>
    %167 = tpu.matmul %164, %166, %cst_72 {dimension_numbers = #tpu.dot_dimension_numbers<[1], [0], [0], [1], [0, 0, 1, 1], [], []>} : vector<8x128xf32>, vector<128x64xf32>, vector<8x64xf32> -> vector<8x64xf32>
    %c0_73 = arith.constant 0 : index
    %c0_74 = arith.constant 0 : index
    %c0_75 = arith.constant 0 : index
    %168 = vector.load %arg14[%c0_73, %c0_74, %c0_75] : memref<2x1x64xf32, #tpu.memory_space<vmem>>, vector<1x1x64xf32>
    %169 = vector.shape_cast %168 : vector<1x1x64xf32> to vector<1x64xf32>
    %170 = vector.broadcast %169 : vector<1x64xf32> to vector<8x64xf32>
    %171 = arith.addf %167, %170 : vector<8x64xf32>
    %172 = arith.addf %171, %144 : vector<8x64xf32>
    %c0_76 = arith.constant 0 : index
    %c0_77 = arith.constant 0 : index
    %c0_78 = arith.constant 0 : index
    %173 = vector.load %arg15[%c0_76, %c0_77, %c0_78] : memref<2x1x64xf32, #tpu.memory_space<vmem>>, vector<1x1x64xf32>
    %174 = vector.shape_cast %173 : vector<1x1x64xf32> to vector<1x64xf32>
    %c0_79 = arith.constant 0 : index
    %c0_80 = arith.constant 0 : index
    %c0_81 = arith.constant 0 : index
    %175 = vector.load %arg16[%c0_79, %c0_80, %c0_81] : memref<2x1x64xf32, #tpu.memory_space<vmem>>, vector<1x1x64xf32>
    %176 = vector.shape_cast %175 : vector<1x1x64xf32> to vector<1x64xf32>
    %cst_82 = arith.constant dense<0.000000e+00> : vector<8xf32>
    %177 = vector.multi_reduction <add>, %172, %cst_82 [1] : vector<8x64xf32> to vector<8xf32>
    %178 = vector.shape_cast %177 : vector<8xf32> to vector<8x1xf32>
    %cst_83 = arith.constant 6.400000e+01 : f32
    %179 = vector.broadcast %cst_83 : f32 to vector<8x1xf32>
    %180 = arith.divf %178, %179 : vector<8x1xf32>
    %181 = vector.broadcast %180 : vector<8x1xf32> to vector<8x64xf32>
    %182 = arith.subf %172, %181 : vector<8x64xf32>
    %183 = arith.mulf %182, %182 : vector<8x64xf32>
    %cst_84 = arith.constant dense<0.000000e+00> : vector<8xf32>
    %184 = vector.multi_reduction <add>, %183, %cst_84 [1] : vector<8x64xf32> to vector<8xf32>
    %185 = vector.shape_cast %184 : vector<8xf32> to vector<8x1xf32>
    %cst_85 = arith.constant 6.400000e+01 : f32
    %186 = vector.broadcast %cst_85 : f32 to vector<8x1xf32>
    %187 = arith.divf %185, %186 : vector<8x1xf32>
    %cst_86 = arith.constant 9.99999974E-6 : f32
    %188 = vector.broadcast %cst_86 : f32 to vector<8x1xf32>
    %189 = arith.addf %187, %188 : vector<8x1xf32>
    %190 = math.rsqrt %189 : vector<8x1xf32>
    %191 = vector.broadcast %190 : vector<8x1xf32> to vector<8x64xf32>
    %192 = arith.mulf %182, %191 : vector<8x64xf32>
    %193 = vector.broadcast %174 : vector<1x64xf32> to vector<8x64xf32>
    %194 = arith.mulf %192, %193 : vector<8x64xf32>
    %195 = vector.broadcast %176 : vector<1x64xf32> to vector<8x64xf32>
    %196 = arith.addf %194, %195 : vector<8x64xf32>
    %c1 = arith.constant 1 : index
    %c0_87 = arith.constant 0 : index
    %c0_88 = arith.constant 0 : index
    %197 = vector.load %arg5[%c1, %c0_87, %c0_88] : memref<2x64x192xf32, #tpu.memory_space<vmem>>, vector<1x64x192xf32>
    %198 = vector.shape_cast %197 : vector<1x64x192xf32> to vector<64x192xf32>
    %cst_89 = arith.constant dense<0.000000e+00> : vector<8x192xf32>
    %199 = tpu.matmul %196, %198, %cst_89 {dimension_numbers = #tpu.dot_dimension_numbers<[1], [0], [0], [1], [0, 0, 1, 1], [], []>} : vector<8x64xf32>, vector<64x192xf32>, vector<8x192xf32> -> vector<8x192xf32>
    %c1_90 = arith.constant 1 : index
    %c0_91 = arith.constant 0 : index
    %c0_92 = arith.constant 0 : index
    %200 = vector.load %arg6[%c1_90, %c0_91, %c0_92] : memref<2x1x192xf32, #tpu.memory_space<vmem>>, vector<1x1x192xf32>
    %201 = vector.shape_cast %200 : vector<1x1x192xf32> to vector<1x192xf32>
    %202 = vector.broadcast %201 : vector<1x192xf32> to vector<8x192xf32>
    %203 = arith.addf %199, %202 : vector<8x192xf32>
    %204 = vector.extract_strided_slice %203 {offsets = [0, 0], sizes = [8, 64], strides = [1, 1]} : vector<8x192xf32> to vector<8x64xf32>
    %205 = vector.extract_strided_slice %203 {offsets = [0, 64], sizes = [8, 64], strides = [1, 1]} : vector<8x192xf32> to vector<8x64xf32>
    %206 = vector.extract_strided_slice %203 {offsets = [0, 128], sizes = [8, 64], strides = [1, 1]} : vector<8x192xf32> to vector<8x64xf32>
    %207 = vector.extract_strided_slice %204 {offsets = [0, 0], sizes = [8, 16], strides = [1, 1]} : vector<8x64xf32> to vector<8x16xf32>
    %208 = vector.extract_strided_slice %205 {offsets = [0, 0], sizes = [8, 16], strides = [1, 1]} : vector<8x64xf32> to vector<8x16xf32>
    %209 = vector.extract_strided_slice %206 {offsets = [0, 0], sizes = [8, 16], strides = [1, 1]} : vector<8x64xf32> to vector<8x16xf32>
    %cst_93 = arith.constant dense<0.000000e+00> : vector<8x8xf32>
    %210 = tpu.matmul %207, %208, %cst_93 {dimension_numbers = #tpu.dot_dimension_numbers<[1], [1], [0], [0], [0, 0, 1, 0], [], []>} : vector<8x16xf32>, vector<8x16xf32>, vector<8x8xf32> -> vector<8x8xf32>
    %cst_94 = arith.constant 2.500000e-01 : f32
    %211 = vector.broadcast %cst_94 : f32 to vector<8x8xf32>
    %212 = arith.mulf %210, %211 : vector<8x8xf32>
    %213 = vector.broadcast %25 : vector<1x8xf32> to vector<8x8xf32>
    %214 = arith.addf %212, %213 : vector<8x8xf32>
    %cst_95 = arith.constant dense<0xFF800000> : vector<8xf32>
    %215 = vector.multi_reduction <maximumf>, %214, %cst_95 [1] : vector<8x8xf32> to vector<8xf32>
    %216 = vector.shape_cast %215 : vector<8xf32> to vector<8x1xf32>
    %217 = vector.broadcast %216 : vector<8x1xf32> to vector<8x8xf32>
    %218 = arith.subf %214, %217 : vector<8x8xf32>
    %219 = math.exp %218 : vector<8x8xf32>
    %cst_96 = arith.constant dense<0.000000e+00> : vector<8xf32>
    %220 = vector.multi_reduction <add>, %219, %cst_96 [1] : vector<8x8xf32> to vector<8xf32>
    %221 = vector.shape_cast %220 : vector<8xf32> to vector<8x1xf32>
    %cst_97 = arith.constant dense<0.000000e+00> : vector<8x16xf32>
    %222 = tpu.matmul %219, %209, %cst_97 {dimension_numbers = #tpu.dot_dimension_numbers<[1], [0], [0], [1], [0, 0, 1, 1], [], []>} : vector<8x8xf32>, vector<8x16xf32>, vector<8x16xf32> -> vector<8x16xf32>
    %223 = tpu.reciprocal %221 {approx = true} : vector<8x1xf32> -> vector<8x1xf32>
    %224 = vector.broadcast %223 : vector<8x1xf32> to vector<8x16xf32>
    %225 = arith.mulf %222, %224 : vector<8x16xf32>
    %226 = vector.extract_strided_slice %204 {offsets = [0, 16], sizes = [8, 16], strides = [1, 1]} : vector<8x64xf32> to vector<8x16xf32>
    %227 = vector.extract_strided_slice %205 {offsets = [0, 16], sizes = [8, 16], strides = [1, 1]} : vector<8x64xf32> to vector<8x16xf32>
    %228 = vector.extract_strided_slice %206 {offsets = [0, 16], sizes = [8, 16], strides = [1, 1]} : vector<8x64xf32> to vector<8x16xf32>
    %cst_98 = arith.constant dense<0.000000e+00> : vector<8x8xf32>
    %229 = tpu.matmul %226, %227, %cst_98 {dimension_numbers = #tpu.dot_dimension_numbers<[1], [1], [0], [0], [0, 0, 1, 0], [], []>} : vector<8x16xf32>, vector<8x16xf32>, vector<8x8xf32> -> vector<8x8xf32>
    %cst_99 = arith.constant 2.500000e-01 : f32
    %230 = vector.broadcast %cst_99 : f32 to vector<8x8xf32>
    %231 = arith.mulf %229, %230 : vector<8x8xf32>
    %232 = vector.broadcast %25 : vector<1x8xf32> to vector<8x8xf32>
    %233 = arith.addf %231, %232 : vector<8x8xf32>
    %cst_100 = arith.constant dense<0xFF800000> : vector<8xf32>
    %234 = vector.multi_reduction <maximumf>, %233, %cst_100 [1] : vector<8x8xf32> to vector<8xf32>
    %235 = vector.shape_cast %234 : vector<8xf32> to vector<8x1xf32>
    %236 = vector.broadcast %235 : vector<8x1xf32> to vector<8x8xf32>
    %237 = arith.subf %233, %236 : vector<8x8xf32>
    %238 = math.exp %237 : vector<8x8xf32>
    %cst_101 = arith.constant dense<0.000000e+00> : vector<8xf32>
    %239 = vector.multi_reduction <add>, %238, %cst_101 [1] : vector<8x8xf32> to vector<8xf32>
    %240 = vector.shape_cast %239 : vector<8xf32> to vector<8x1xf32>
    %cst_102 = arith.constant dense<0.000000e+00> : vector<8x16xf32>
    %241 = tpu.matmul %238, %228, %cst_102 {dimension_numbers = #tpu.dot_dimension_numbers<[1], [0], [0], [1], [0, 0, 1, 1], [], []>} : vector<8x8xf32>, vector<8x16xf32>, vector<8x16xf32> -> vector<8x16xf32>
    %242 = tpu.reciprocal %240 {approx = true} : vector<8x1xf32> -> vector<8x1xf32>
    %243 = vector.broadcast %242 : vector<8x1xf32> to vector<8x16xf32>
    %244 = arith.mulf %241, %243 : vector<8x16xf32>
    %245 = vector.extract_strided_slice %204 {offsets = [0, 32], sizes = [8, 16], strides = [1, 1]} : vector<8x64xf32> to vector<8x16xf32>
    %246 = vector.extract_strided_slice %205 {offsets = [0, 32], sizes = [8, 16], strides = [1, 1]} : vector<8x64xf32> to vector<8x16xf32>
    %247 = vector.extract_strided_slice %206 {offsets = [0, 32], sizes = [8, 16], strides = [1, 1]} : vector<8x64xf32> to vector<8x16xf32>
    %cst_103 = arith.constant dense<0.000000e+00> : vector<8x8xf32>
    %248 = tpu.matmul %245, %246, %cst_103 {dimension_numbers = #tpu.dot_dimension_numbers<[1], [1], [0], [0], [0, 0, 1, 0], [], []>} : vector<8x16xf32>, vector<8x16xf32>, vector<8x8xf32> -> vector<8x8xf32>
    %cst_104 = arith.constant 2.500000e-01 : f32
    %249 = vector.broadcast %cst_104 : f32 to vector<8x8xf32>
    %250 = arith.mulf %248, %249 : vector<8x8xf32>
    %251 = vector.broadcast %25 : vector<1x8xf32> to vector<8x8xf32>
    %252 = arith.addf %250, %251 : vector<8x8xf32>
    %cst_105 = arith.constant dense<0xFF800000> : vector<8xf32>
    %253 = vector.multi_reduction <maximumf>, %252, %cst_105 [1] : vector<8x8xf32> to vector<8xf32>
    %254 = vector.shape_cast %253 : vector<8xf32> to vector<8x1xf32>
    %255 = vector.broadcast %254 : vector<8x1xf32> to vector<8x8xf32>
    %256 = arith.subf %252, %255 : vector<8x8xf32>
    %257 = math.exp %256 : vector<8x8xf32>
    %cst_106 = arith.constant dense<0.000000e+00> : vector<8xf32>
    %258 = vector.multi_reduction <add>, %257, %cst_106 [1] : vector<8x8xf32> to vector<8xf32>
    %259 = vector.shape_cast %258 : vector<8xf32> to vector<8x1xf32>
    %cst_107 = arith.constant dense<0.000000e+00> : vector<8x16xf32>
    %260 = tpu.matmul %257, %247, %cst_107 {dimension_numbers = #tpu.dot_dimension_numbers<[1], [0], [0], [1], [0, 0, 1, 1], [], []>} : vector<8x8xf32>, vector<8x16xf32>, vector<8x16xf32> -> vector<8x16xf32>
    %261 = tpu.reciprocal %259 {approx = true} : vector<8x1xf32> -> vector<8x1xf32>
    %262 = vector.broadcast %261 : vector<8x1xf32> to vector<8x16xf32>
    %263 = arith.mulf %260, %262 : vector<8x16xf32>
    %264 = vector.extract_strided_slice %204 {offsets = [0, 48], sizes = [8, 16], strides = [1, 1]} : vector<8x64xf32> to vector<8x16xf32>
    %265 = vector.extract_strided_slice %205 {offsets = [0, 48], sizes = [8, 16], strides = [1, 1]} : vector<8x64xf32> to vector<8x16xf32>
    %266 = vector.extract_strided_slice %206 {offsets = [0, 48], sizes = [8, 16], strides = [1, 1]} : vector<8x64xf32> to vector<8x16xf32>
    %cst_108 = arith.constant dense<0.000000e+00> : vector<8x8xf32>
    %267 = tpu.matmul %264, %265, %cst_108 {dimension_numbers = #tpu.dot_dimension_numbers<[1], [1], [0], [0], [0, 0, 1, 0], [], []>} : vector<8x16xf32>, vector<8x16xf32>, vector<8x8xf32> -> vector<8x8xf32>
    %cst_109 = arith.constant 2.500000e-01 : f32
    %268 = vector.broadcast %cst_109 : f32 to vector<8x8xf32>
    %269 = arith.mulf %267, %268 : vector<8x8xf32>
    %270 = vector.broadcast %25 : vector<1x8xf32> to vector<8x8xf32>
    %271 = arith.addf %269, %270 : vector<8x8xf32>
    %cst_110 = arith.constant dense<0xFF800000> : vector<8xf32>
    %272 = vector.multi_reduction <maximumf>, %271, %cst_110 [1] : vector<8x8xf32> to vector<8xf32>
    %273 = vector.shape_cast %272 : vector<8xf32> to vector<8x1xf32>
    %274 = vector.broadcast %273 : vector<8x1xf32> to vector<8x8xf32>
    %275 = arith.subf %271, %274 : vector<8x8xf32>
    %276 = math.exp %275 : vector<8x8xf32>
    %cst_111 = arith.constant dense<0.000000e+00> : vector<8xf32>
    %277 = vector.multi_reduction <add>, %276, %cst_111 [1] : vector<8x8xf32> to vector<8xf32>
    %278 = vector.shape_cast %277 : vector<8xf32> to vector<8x1xf32>
    %cst_112 = arith.constant dense<0.000000e+00> : vector<8x16xf32>
    %279 = tpu.matmul %276, %266, %cst_112 {dimension_numbers = #tpu.dot_dimension_numbers<[1], [0], [0], [1], [0, 0, 1, 1], [], []>} : vector<8x8xf32>, vector<8x16xf32>, vector<8x16xf32> -> vector<8x16xf32>
    %280 = tpu.reciprocal %278 {approx = true} : vector<8x1xf32> -> vector<8x1xf32>
    %281 = vector.broadcast %280 : vector<8x1xf32> to vector<8x16xf32>
    %282 = arith.mulf %279, %281 : vector<8x16xf32>
    %283 = tpu.concatenate %225, %244, %263, %282 in 1 : vector<8x16xf32>, vector<8x16xf32>, vector<8x16xf32>, vector<8x16xf32> -> vector<8x64xf32>
    %c1_113 = arith.constant 1 : index
    %c0_114 = arith.constant 0 : index
    %c0_115 = arith.constant 0 : index
    %284 = vector.load %arg7[%c1_113, %c0_114, %c0_115] : memref<2x64x64xf32, #tpu.memory_space<vmem>>, vector<1x64x64xf32>
    %285 = vector.shape_cast %284 : vector<1x64x64xf32> to vector<64x64xf32>
    %cst_116 = arith.constant dense<0.000000e+00> : vector<8x64xf32>
    %286 = tpu.matmul %283, %285, %cst_116 {dimension_numbers = #tpu.dot_dimension_numbers<[1], [0], [0], [1], [0, 0, 1, 1], [], []>} : vector<8x64xf32>, vector<64x64xf32>, vector<8x64xf32> -> vector<8x64xf32>
    %c1_117 = arith.constant 1 : index
    %c0_118 = arith.constant 0 : index
    %c0_119 = arith.constant 0 : index
    %287 = vector.load %arg8[%c1_117, %c0_118, %c0_119] : memref<2x1x64xf32, #tpu.memory_space<vmem>>, vector<1x1x64xf32>
    %288 = vector.shape_cast %287 : vector<1x1x64xf32> to vector<1x64xf32>
    %289 = vector.broadcast %288 : vector<1x64xf32> to vector<8x64xf32>
    %290 = arith.addf %286, %289 : vector<8x64xf32>
    %291 = arith.addf %290, %196 : vector<8x64xf32>
    %c1_120 = arith.constant 1 : index
    %c0_121 = arith.constant 0 : index
    %c0_122 = arith.constant 0 : index
    %292 = vector.load %arg9[%c1_120, %c0_121, %c0_122] : memref<2x1x64xf32, #tpu.memory_space<vmem>>, vector<1x1x64xf32>
    %293 = vector.shape_cast %292 : vector<1x1x64xf32> to vector<1x64xf32>
    %c1_123 = arith.constant 1 : index
    %c0_124 = arith.constant 0 : index
    %c0_125 = arith.constant 0 : index
    %294 = vector.load %arg10[%c1_123, %c0_124, %c0_125] : memref<2x1x64xf32, #tpu.memory_space<vmem>>, vector<1x1x64xf32>
    %295 = vector.shape_cast %294 : vector<1x1x64xf32> to vector<1x64xf32>
    %cst_126 = arith.constant dense<0.000000e+00> : vector<8xf32>
    %296 = vector.multi_reduction <add>, %291, %cst_126 [1] : vector<8x64xf32> to vector<8xf32>
    %297 = vector.shape_cast %296 : vector<8xf32> to vector<8x1xf32>
    %cst_127 = arith.constant 6.400000e+01 : f32
    %298 = vector.broadcast %cst_127 : f32 to vector<8x1xf32>
    %299 = arith.divf %297, %298 : vector<8x1xf32>
    %300 = vector.broadcast %299 : vector<8x1xf32> to vector<8x64xf32>
    %301 = arith.subf %291, %300 : vector<8x64xf32>
    %302 = arith.mulf %301, %301 : vector<8x64xf32>
    %cst_128 = arith.constant dense<0.000000e+00> : vector<8xf32>
    %303 = vector.multi_reduction <add>, %302, %cst_128 [1] : vector<8x64xf32> to vector<8xf32>
    %304 = vector.shape_cast %303 : vector<8xf32> to vector<8x1xf32>
    %cst_129 = arith.constant 6.400000e+01 : f32
    %305 = vector.broadcast %cst_129 : f32 to vector<8x1xf32>
    %306 = arith.divf %304, %305 : vector<8x1xf32>
    %cst_130 = arith.constant 9.99999974E-6 : f32
    %307 = vector.broadcast %cst_130 : f32 to vector<8x1xf32>
    %308 = arith.addf %306, %307 : vector<8x1xf32>
    %309 = math.rsqrt %308 : vector<8x1xf32>
    %310 = vector.broadcast %309 : vector<8x1xf32> to vector<8x64xf32>
    %311 = arith.mulf %301, %310 : vector<8x64xf32>
    %312 = vector.broadcast %293 : vector<1x64xf32> to vector<8x64xf32>
    %313 = arith.mulf %311, %312 : vector<8x64xf32>
    %314 = vector.broadcast %295 : vector<1x64xf32> to vector<8x64xf32>
    %315 = arith.addf %313, %314 : vector<8x64xf32>
    %c1_131 = arith.constant 1 : index
    %c0_132 = arith.constant 0 : index
    %c0_133 = arith.constant 0 : index
    %316 = vector.load %arg11[%c1_131, %c0_132, %c0_133] : memref<2x64x128xf32, #tpu.memory_space<vmem>>, vector<1x64x128xf32>
    %317 = vector.shape_cast %316 : vector<1x64x128xf32> to vector<64x128xf32>
    %cst_134 = arith.constant dense<0.000000e+00> : vector<8x128xf32>
    %318 = tpu.matmul %315, %317, %cst_134 {dimension_numbers = #tpu.dot_dimension_numbers<[1], [0], [0], [1], [0, 0, 1, 1], [], []>} : vector<8x64xf32>, vector<64x128xf32>, vector<8x128xf32> -> vector<8x128xf32>
    %c1_135 = arith.constant 1 : index
    %c0_136 = arith.constant 0 : index
    %c0_137 = arith.constant 0 : index
    %319 = vector.load %arg12[%c1_135, %c0_136, %c0_137] : memref<2x1x128xf32, #tpu.memory_space<vmem>>, vector<1x1x128xf32>
    %320 = vector.shape_cast %319 : vector<1x1x128xf32> to vector<1x128xf32>
    %321 = vector.broadcast %320 : vector<1x128xf32> to vector<8x128xf32>
    %322 = arith.addf %318, %321 : vector<8x128xf32>
    %323 = arith.mulf %322, %322 : vector<8x128xf32>
    %324 = arith.mulf %322, %323 : vector<8x128xf32>
    %cst_138 = arith.constant 4.471500e-02 : f32
    %325 = vector.broadcast %cst_138 : f32 to vector<8x128xf32>
    %326 = arith.mulf %325, %324 : vector<8x128xf32>
    %327 = arith.addf %322, %326 : vector<8x128xf32>
    %cst_139 = arith.constant 0.797884583 : f32
    %328 = vector.broadcast %cst_139 : f32 to vector<8x128xf32>
    %329 = arith.mulf %328, %327 : vector<8x128xf32>
    %330 = math.tanh %329 : vector<8x128xf32>
    %cst_140 = arith.constant 1.000000e+00 : f32
    %331 = vector.broadcast %cst_140 : f32 to vector<8x128xf32>
    %332 = arith.addf %331, %330 : vector<8x128xf32>
    %cst_141 = arith.constant 5.000000e-01 : f32
    %333 = vector.broadcast %cst_141 : f32 to vector<8x128xf32>
    %334 = arith.mulf %333, %332 : vector<8x128xf32>
    %335 = arith.mulf %322, %334 : vector<8x128xf32>
    %c1_142 = arith.constant 1 : index
    %c0_143 = arith.constant 0 : index
    %c0_144 = arith.constant 0 : index
    %336 = vector.load %arg13[%c1_142, %c0_143, %c0_144] : memref<2x128x64xf32, #tpu.memory_space<vmem>>, vector<1x128x64xf32>
    %337 = vector.shape_cast %336 : vector<1x128x64xf32> to vector<128x64xf32>
    %cst_145 = arith.constant dense<0.000000e+00> : vector<8x64xf32>
    %338 = tpu.matmul %335, %337, %cst_145 {dimension_numbers = #tpu.dot_dimension_numbers<[1], [0], [0], [1], [0, 0, 1, 1], [], []>} : vector<8x128xf32>, vector<128x64xf32>, vector<8x64xf32> -> vector<8x64xf32>
    %c1_146 = arith.constant 1 : index
    %c0_147 = arith.constant 0 : index
    %c0_148 = arith.constant 0 : index
    %339 = vector.load %arg14[%c1_146, %c0_147, %c0_148] : memref<2x1x64xf32, #tpu.memory_space<vmem>>, vector<1x1x64xf32>
    %340 = vector.shape_cast %339 : vector<1x1x64xf32> to vector<1x64xf32>
    %341 = vector.broadcast %340 : vector<1x64xf32> to vector<8x64xf32>
    %342 = arith.addf %338, %341 : vector<8x64xf32>
    %343 = arith.addf %342, %315 : vector<8x64xf32>
    %c1_149 = arith.constant 1 : index
    %c0_150 = arith.constant 0 : index
    %c0_151 = arith.constant 0 : index
    %344 = vector.load %arg15[%c1_149, %c0_150, %c0_151] : memref<2x1x64xf32, #tpu.memory_space<vmem>>, vector<1x1x64xf32>
    %345 = vector.shape_cast %344 : vector<1x1x64xf32> to vector<1x64xf32>
    %c1_152 = arith.constant 1 : index
    %c0_153 = arith.constant 0 : index
    %c0_154 = arith.constant 0 : index
    %346 = vector.load %arg16[%c1_152, %c0_153, %c0_154] : memref<2x1x64xf32, #tpu.memory_space<vmem>>, vector<1x1x64xf32>
    %347 = vector.shape_cast %346 : vector<1x1x64xf32> to vector<1x64xf32>
    %cst_155 = arith.constant dense<0.000000e+00> : vector<8xf32>
    %348 = vector.multi_reduction <add>, %343, %cst_155 [1] : vector<8x64xf32> to vector<8xf32>
    %349 = vector.shape_cast %348 : vector<8xf32> to vector<8x1xf32>
    %cst_156 = arith.constant 6.400000e+01 : f32
    %350 = vector.broadcast %cst_156 : f32 to vector<8x1xf32>
    %351 = arith.divf %349, %350 : vector<8x1xf32>
    %352 = vector.broadcast %351 : vector<8x1xf32> to vector<8x64xf32>
    %353 = arith.subf %343, %352 : vector<8x64xf32>
    %354 = arith.mulf %353, %353 : vector<8x64xf32>
    %cst_157 = arith.constant dense<0.000000e+00> : vector<8xf32>
    %355 = vector.multi_reduction <add>, %354, %cst_157 [1] : vector<8x64xf32> to vector<8xf32>
    %356 = vector.shape_cast %355 : vector<8xf32> to vector<8x1xf32>
    %cst_158 = arith.constant 6.400000e+01 : f32
    %357 = vector.broadcast %cst_158 : f32 to vector<8x1xf32>
    %358 = arith.divf %356, %357 : vector<8x1xf32>
    %cst_159 = arith.constant 9.99999974E-6 : f32
    %359 = vector.broadcast %cst_159 : f32 to vector<8x1xf32>
    %360 = arith.addf %358, %359 : vector<8x1xf32>
    %361 = math.rsqrt %360 : vector<8x1xf32>
    %362 = vector.broadcast %361 : vector<8x1xf32> to vector<8x64xf32>
    %363 = arith.mulf %353, %362 : vector<8x64xf32>
    %364 = vector.broadcast %345 : vector<1x64xf32> to vector<8x64xf32>
    %365 = arith.mulf %363, %364 : vector<8x64xf32>
    %366 = vector.broadcast %347 : vector<1x64xf32> to vector<8x64xf32>
    %367 = arith.addf %365, %366 : vector<8x64xf32>
    %c0_160 = arith.constant 0 : index
    %c0_161 = arith.constant 0 : index
    %368 = vector.load %arg17[%c0_160, %c0_161] : memref<64x128xf32, #tpu.memory_space<vmem>>, vector<64x128xf32>
    %cst_162 = arith.constant dense<0.000000e+00> : vector<8x128xf32>
    %369 = tpu.matmul %367, %368, %cst_162 {dimension_numbers = #tpu.dot_dimension_numbers<[1], [0], [0], [1], [0, 0, 1, 1], [], []>} : vector<8x64xf32>, vector<64x128xf32>, vector<8x128xf32> -> vector<8x128xf32>
    %c0_163 = arith.constant 0 : index
    %c0_164 = arith.constant 0 : index
    %370 = vector.load %arg18[%c0_163, %c0_164] : memref<1x128xf32, #tpu.memory_space<vmem>>, vector<1x128xf32>
    %371 = vector.broadcast %370 : vector<1x128xf32> to vector<8x128xf32>
    %372 = arith.addf %369, %371 : vector<8x128xf32>
    %c0_165 = arith.constant 0 : index
    %c0_166 = arith.constant 0 : index
    %c0_167 = arith.constant 0 : index
    %373 = vector.load %arg19[%c0_165, %c0_166, %c0_167] : memref<1x8x128xf32, #tpu.memory_space<vmem>>, vector<1x8x128xf32>
    %374 = vector.shape_cast %373 : vector<1x8x128xf32> to vector<8x128xf32>
    %375 = vector.shape_cast %372 : vector<8x128xf32> to vector<1x8x128xf32>
    tpu.vector_store %arg19[%c0_165, %c0_166, %c0_167], %375 {strides = array<i32>} : memref<1x8x128xf32, #tpu.memory_space<vmem>>, vector<1x8x128xf32>,
    return
  }
  func.func @transform_0(%arg0: i32) -> (i32, i32, i32) {
    %c0_i32 = arith.constant 0 : i32
    %c0_i32_0 = arith.constant 0 : i32
    %c0_i32_1 = arith.constant 0 : i32
    return %arg0, %c0_i32, %c0_i32_0 : i32, i32, i32
  }
  func.func @transform_1(%arg0: i32) -> (i32, i32, i32) {
    %c0_i32 = arith.constant 0 : i32
    %c0_i32_0 = arith.constant 0 : i32
    %c0_i32_1 = arith.constant 0 : i32
    return %arg0, %c0_i32, %c0_i32_0 : i32, i32, i32
  }
  func.func @transform_2(%arg0: i32) -> (i32, i32) {
    %c0_i32 = arith.constant 0 : i32
    %c0_i32_0 = arith.constant 0 : i32
    %c0_i32_1 = arith.constant 0 : i32
    return %c0_i32, %c0_i32_0 : i32, i32
  }
  func.func @transform_3(%arg0: i32) -> (i32, i32) {
    %c0_i32 = arith.constant 0 : i32
    %c0_i32_0 = arith.constant 0 : i32
    %c0_i32_1 = arith.constant 0 : i32
    return %c0_i32, %c0_i32_0 : i32, i32
  }
  func.func @transform_4(%arg0: i32) -> (i32, i32, i32) {
    %c0_i32 = arith.constant 0 : i32
    %c0_i32_0 = arith.constant 0 : i32
    %c0_i32_1 = arith.constant 0 : i32
    %c0_i32_2 = arith.constant 0 : i32
    return %c0_i32, %c0_i32_0, %c0_i32_1 : i32, i32, i32
  }
  func.func @transform_5(%arg0: i32) -> (i32, i32, i32) {
    %c0_i32 = arith.constant 0 : i32
    %c0_i32_0 = arith.constant 0 : i32
    %c0_i32_1 = arith.constant 0 : i32
    %c0_i32_2 = arith.constant 0 : i32
    return %c0_i32, %c0_i32_0, %c0_i32_1 : i32, i32, i32
  }
  func.func @transform_6(%arg0: i32) -> (i32, i32, i32) {
    %c0_i32 = arith.constant 0 : i32
    %c0_i32_0 = arith.constant 0 : i32
    %c0_i32_1 = arith.constant 0 : i32
    %c0_i32_2 = arith.constant 0 : i32
    return %c0_i32, %c0_i32_0, %c0_i32_1 : i32, i32, i32
  }
  func.func @transform_7(%arg0: i32) -> (i32, i32, i32) {
    %c0_i32 = arith.constant 0 : i32
    %c0_i32_0 = arith.constant 0 : i32
    %c0_i32_1 = arith.constant 0 : i32
    %c0_i32_2 = arith.constant 0 : i32
    return %c0_i32, %c0_i32_0, %c0_i32_1 : i32, i32, i32
  }
  func.func @transform_8(%arg0: i32) -> (i32, i32, i32) {
    %c0_i32 = arith.constant 0 : i32
    %c0_i32_0 = arith.constant 0 : i32
    %c0_i32_1 = arith.constant 0 : i32
    %c0_i32_2 = arith.constant 0 : i32
    return %c0_i32, %c0_i32_0, %c0_i32_1 : i32, i32, i32
  }
  func.func @transform_9(%arg0: i32) -> (i32, i32, i32) {
    %c0_i32 = arith.constant 0 : i32
    %c0_i32_0 = arith.constant 0 : i32
    %c0_i32_1 = arith.constant 0 : i32
    %c0_i32_2 = arith.constant 0 : i32
    return %c0_i32, %c0_i32_0, %c0_i32_1 : i32, i32, i32
  }
  func.func @transform_10(%arg0: i32) -> (i32, i32, i32) {
    %c0_i32 = arith.constant 0 : i32
    %c0_i32_0 = arith.constant 0 : i32
    %c0_i32_1 = arith.constant 0 : i32
    %c0_i32_2 = arith.constant 0 : i32
    return %c0_i32, %c0_i32_0, %c0_i32_1 : i32, i32, i32
  }
  func.func @transform_11(%arg0: i32) -> (i32, i32, i32) {
    %c0_i32 = arith.constant 0 : i32
    %c0_i32_0 = arith.constant 0 : i32
    %c0_i32_1 = arith.constant 0 : i32
    %c0_i32_2 = arith.constant 0 : i32
    return %c0_i32, %c0_i32_0, %c0_i32_1 : i32, i32, i32
  }
  func.func @transform_12(%arg0: i32) -> (i32, i32, i32) {
    %c0_i32 = arith.constant 0 : i32
    %c0_i32_0 = arith.constant 0 : i32
    %c0_i32_1 = arith.constant 0 : i32
    %c0_i32_2 = arith.constant 0 : i32
    return %c0_i32, %c0_i32_0, %c0_i32_1 : i32, i32, i32
  }
  func.func @transform_13(%arg0: i32) -> (i32, i32, i32) {
    %c0_i32 = arith.constant 0 : i32
    %c0_i32_0 = arith.constant 0 : i32
    %c0_i32_1 = arith.constant 0 : i32
    %c0_i32_2 = arith.constant 0 : i32
    return %c0_i32, %c0_i32_0, %c0_i32_1 : i32, i32, i32
  }
  func.func @transform_14(%arg0: i32) -> (i32, i32, i32) {
    %c0_i32 = arith.constant 0 : i32
    %c0_i32_0 = arith.constant 0 : i32
    %c0_i32_1 = arith.constant 0 : i32
    %c0_i32_2 = arith.constant 0 : i32
    return %c0_i32, %c0_i32_0, %c0_i32_1 : i32, i32, i32
  }
  func.func @transform_15(%arg0: i32) -> (i32, i32, i32) {
    %c0_i32 = arith.constant 0 : i32
    %c0_i32_0 = arith.constant 0 : i32
    %c0_i32_1 = arith.constant 0 : i32
    %c0_i32_2 = arith.constant 0 : i32
    return %c0_i32, %c0_i32_0, %c0_i32_1 : i32, i32, i32
  }
  func.func @transform_16(%arg0: i32) -> (i32, i32) {
    %c0_i32 = arith.constant 0 : i32
    %c0_i32_0 = arith.constant 0 : i32
    %c0_i32_1 = arith.constant 0 : i32
    return %c0_i32, %c0_i32_0 : i32, i32
  }
  func.func @transform_17(%arg0: i32) -> (i32, i32) {
    %c0_i32 = arith.constant 0 : i32
    %c0_i32_0 = arith.constant 0 : i32
    %c0_i32_1 = arith.constant 0 : i32
    return %c0_i32, %c0_i32_0 : i32, i32
  }
  func.func @transform_18(%arg0: i32) -> (i32, i32, i32) {
    %c0_i32 = arith.constant 0 : i32
    %c0_i32_0 = arith.constant 0 : i32
    %c0_i32_1 = arith.constant 0 : i32
    return %arg0, %c0_i32, %c0_i32_0 : i32, i32, i32
  }
}

</mosaic_0001>

<bundles_post_ra>
// kernel: baseline_model_forward.1
= control target key start
LH: loop header
LB: loop body
LE: loop exit
PB: predicated region body
PF: predicated region fallthrough
CT: control target
= control target key end

     0   :  { %s3676_s27 = smov 0   ;;  %s4368_s0 = inlined_call_operand.vmem [shape: f32[2,8,64], index: 0, kind: input, shape index: {}]   ;;  %s4369_s1 = inlined_call_operand.vmem [shape: f32[2,1,8], index: 1, kind: input, shape index: {}]   ;;  %s4370_s2 = inlined_call_operand.vmem [shape: f32[1,64], index: 2, kind: input, shape index: {}]   ;;  %s4371_s3 = inlined_call_operand.vmem [shape: f32[1,64], index: 3, kind: input, shape index: {}]   ;;  %s4372_s4 = inlined_call_operand.vmem [shape: f32[2,64,192], index: 4, kind: input, shape index: {}]   ;;  %s4373_s5 = inlined_call_operand.vmem [shape: f32[2,1,192], index: 5, kind: input, shape index: {}]   ;;  %s4374_s6 = inlined_call_operand.vmem [shape: f32[2,64,64], index: 6, kind: input, shape index: {}]   ;;  %s4375_s7 = inlined_call_operand.vmem [shape: f32[2,1,64], index: 7, kind: input, shape index: {}]   ;;  %s4376_s8 = inlined_call_operand.vmem [shape: f32[2,1,64], index: 8, kind: input, shape index: {}]   ;;  %s4377_s9 = inlined_call_operand.vmem [shape: f32[2,1,64], index: 9, kind: input, shape index: {}]   ;;  %s4378_s10 = inlined_call_operand.vmem [shape: f32[2,64,128], index: 10, kind: input, shape index: {}]   ;;  %s4379_s11 = inlined_call_operand.vmem [shape: f32[2,1,128], index: 11, kind: input, shape index: {}]   ;;  %s4380_s12 = inlined_call_operand.vmem [shape: f32[2,128,64], index: 12, kind: input, shape index: {}]   ;;  %s4381_s13 = inlined_call_operand.vmem [shape: f32[2,1,64], index: 13, kind: input, shape index: {}]   ;;  %s4382_s14 = inlined_call_operand.vmem [shape: f32[2,1,64], index: 14, kind: input, shape index: {}]   ;;  %s4383_s15 = inlined_call_operand.vmem [shape: f32[2,1,64], index: 15, kind: input, shape index: {}]   ;;  %s4384_s16 = inlined_call_operand.vmem [shape: f32[64,128], index: 16, kind: input, shape index: {}]   ;;  %s4385_s17 = inlined_call_operand.vmem [shape: f32[1,128], index: 17, kind: input, shape index: {}]   ;;  %s4386_s18 = inlined_call_operand.vmem [shape: f32[2,8,128], index: 18, kind: output, shape index: {}]  }
   0x1   :  { %4396 = sst [smem:[#allocation2_spill]] %s4368_s0 }
   0x2   :  { %4397 = sst [smem:[#allocation3_spill]] %s4369_s1 }
   0x3   :  { %4398 = sst [smem:[#allocation4_spill]] %s4370_s2 }
   0x4 LB: > { %s3031_s28 = sadd.s32 4294967295, %s3570_s27   ;;  %p3035_p0 = scmp.ge.s32.totalorder %s3570_s27, 1  ;;  %s3570_s27 = sphi %s3676_s27, %s28_s27  }
   0x5   : > { %p519_p1 = scmp.lt.s32.totalorder %s3570_s27, 3 }
   0x7   : > { %p520_p2 = pnand %p3035_p0, %p519_p1 }
   0x8   : > { %p574_p3 = scmp.lt.s32.totalorder (!%p520_p2), %s3031_s28, 1  ;;  %s4399_s19 = sld [smem:[#allocation2_spill]] (!%p520_p2) }
   0x9   : > { %523 = sbr.rel (%p520_p2) target bundleno = 6388 (0x18f4), region = 92  ;;  %s4392_s2 = smov (!%p520_p2), 48  }
   0xa   : > { %s3575_s23 = smov (!%p520_p2), 64   ;;  %s3576_s24 = smov (!%p520_p2), 112  }
   0xb   : > { %s4401_s30 = sld [smem:[#allocation3_spill]] (!%p520_p2)  ;;  %s4388_s20 = smov (!%p520_p2), 80  }
   0xc   : > { %s4390_s21 = smov (!%p520_p2), 16   ;;  %s4405_s26 = smov (!%p520_p2), 16  }
   0xe   : > { %s4408_s28 = smov (!%p574_p3, %s3031_s28), 1  ;;  %vm588_vm0 = vcmask 523264   ;;  %v633_v7 = vld [vmem:[%s4372_s4 + $0x78] sm:$0xff]  ;;  %v632_v8 = vld [vmem:[%s4372_s4 + $0x70] sm:$0xff]  ;;  %v631_v9 = vld [vmem:[%s4372_s4 + $0x68] sm:$0xff]  ;;  %v3572_v11 = vmov 0.0   ;;  %v636_v33 = vlaneseq }
   0xf   : > { %s4387_s29 = sshll.u32 %s4408_s28, 3  ;;  %665 = vmatprep.subr.mxu0 %v633_v7  ;;  %v630_v10 = vld [vmem:[%s4372_s4 + $0x60] sm:$0xff]  ;;  %713 = vmatprep.mubr.f32.mxu0 %v3572_v11  ;;  %v629_v12 = vld [vmem:[%s4372_s4 + $0x58] sm:$0xff]  ;;  %v628_v13 = vld [vmem:[%s4372_s4 + $0x50] sm:$0xff]  ;;  %vm3573_vm1 = vmmov 0   ;;  %vm723_vm2 = vcmask 130048  }
  0x10   : > { %s577_s1 = scalar_lea.vmem %s4399_s19, %s4387_s29  ;;  %666 = vmatpush1.msra.mxu0 %v632_v8  ;;  %3256 = vmatprep.subr.mxu1 %v3572_v11  ;;  %v627_v14 = vld [vmem:[%s4372_s4 + $0x48] sm:$0xff]  ;;  %v626_v15 = vld [vmem:[%s4372_s4 + $0x40] sm:$0xff]  ;;  %v625_v16 = vld [vmem:[%s4372_s4 + $0x38] sm:$0xff]  ;;  %s4400_s19 = sld [smem:[#allocation4_spill]]  ;;  %v3755_v34 = vshrl.u32 %v636_v33, 7  ;;  %vm806_vm3 = vcmask 64512  }
  0x11   : > { %v585_v0 = vld [vmem:[%s577_s1] sm:$0xff]  ;;  %667 = vmatprep.subr.mxu0 %v631_v9  ;;  %v624_v17 = vld [vmem:[%s4372_s4 + $0x30] sm:$0xff]  ;;  %v623_v18 = vld [vmem:[%s4372_s4 + $0x28] sm:$0xff]  ;;  %3258 = vmatprep.mubr.msk.f32.mxu1 %vm3573_vm1, %v3572_v11  ;;  %s580_s0 = scalar_lea.vmem %s4401_s30, %s4408_s28  ;;  %s4394_s1 = smov 96   ;;  %vm1406_vm4 = vcmask 261120   ;;  %vm1408_vm5 = vcmask 392192  }
  0x12   : > { %v589_v1 = vsel %vm588_vm0, %v585_v0, 0.0  ;;  %668 = vmatpush1.msra.mxu0 %v630_v10  ;;  %v622_v19 = vld [vmem:[%s4372_s4 + $0x20] sm:$0xff]  ;;  %v621_v20 = vld [vmem:[%s4372_s4 + $0x18] sm:$0xff]  ;;  %v620_v21 = vld [vmem:[%s4372_s4 + $0x10] sm:$0xff]  ;;  %v638_v35 = vsub.s32 0, %v3755_v34  ;;  %v642_v40 = vsub.s32 1, %v3755_v34 }
  0x13   : > { %590 = vadd.xlane.f32.xlu0 %v589_v1  ;;  %669 = vmatprep.subr.mxu0 %v629_v12  ;;  %v619_v22 = vld [vmem:[%s4372_s4 + $0x8] sm:$0xff]  ;;  %v618_v23 = vld [vmem:[%s4372_s4] sm:$0xff] }
  0x14   : > { %670 = vmatpush1.msra.mxu0 %v628_v13  ;;  %v3039_v30 = vld [vmem:[%s4371_s3] ss:$0 sm:$0xff] }
  0x15   : > { %671 = vmatprep.subr.mxu0 %v627_v14  ;;  %v634_v36 = vld [vmem:[%s4373_s5] sm:$0x3] }
  0x16   : > { %672 = vmatpush1.msra.mxu0 %v626_v15  ;;  %v3038_v28 = vld [vmem:[%s4400_s19] ss:$0 sm:$0xff]  ;;  %v639_v37 = vrot.slane %v634_v36, %v638_v35  ;;  %v643_v41 = vrot.slane %v634_v36, %v642_v40  ;;  %s3577_s19 = smov 32  }
  0x17   : > { %673 = vmatprep.subr.mxu0 %v625_v16  ;;  %v3792_v45 = vld [vmem:[%s580_s0] ss:$0 sm:$0xff] }
  0x18   : > { %674 = vmatpush1.msra.mxu0 %v624_v17 }
  0x19   : > { %675 = vmatprep.subr.mxu0 %v623_v18 }
  0x1a   : > { %676 = vmatpush1.msra.mxu0 %v622_v19 }
  0x1b   : > { %677 = vmatprep.subr.mxu0 %v621_v20 }
  0x1c   : > { %678 = vmatpush1.msra.mxu0 %v620_v21 }
  0x1d   : > { %679 = vmatprep.subr.mxu0 %v619_v22 }
  0x1e   : > { %680 = vmatpush1.msra.mxu0 %v618_v23 }
  0x1f   : > { %3296 = vmatprep.subr.mxu0 %v3572_v11 }
  0x9c   : > { %v591_v2 = vpop.xlane.xlu0 %590 }
  0x9d   : > { %v593_v3 = vmul.f32 0.015625, %v591_v2 }
  0x9f   : > { %v594_v4 = vsub.f32 %v585_v0, %v593_v3 }
  0xa1   : > { %v595_v5 = vmul.f32 %v594_v4, %v594_v4 }
  0xa3   : > { %v596_v6 = vsel %vm588_vm0, %v595_v5, 0.0 }
  0xa4   : > { %597 = vadd.xlane.f32.xlu0 %v596_v6 }
 0x12d   : > { %v598_v24 = vpop.xlane.xlu0 %597 }
 0x12e   : > { %v599_v25 = vmul.f32 0.015625, %v598_v24 }
 0x130   : > { %v600_v26 = vadd.f32 1e-05, %v599_v25 }
 0x132   : > { %3518 = vrsqrt.f32 %v600_v26 }
 0x13f   : > { %v3519_v27 = vpop.eup %3518 }
 0x140   : > { %v602_v29 = vmul.f32 %v3519_v27, %v594_v4 }
 0x142   : > { %v609_v31 = vmul.f32 %v3038_v28, %v602_v29 }
 0x144   : > { %v3751_v32 = vadd.f32 %v3039_v30, %v609_v31 }
 0x146   : > { %3040 = vmatmul.mubr.msk.f32.vlgmr.msra.gmra.mxu0 %vm588_vm0, %v3751_v32 }
 0x147   : > { %3312 = vmatprep.mubr.msk.f32.mxu0 %vm3573_vm1, %v3572_v11 }
 0x206   : > { %v715_v38 = vpop.f32.mrf.mxu0 }
 0x207   : > { %v3767_v39 = vadd.f32 %v715_v38, %v639_v37 }
 0x208   : > { %v717_v42 = vpop.f32.mrf.mxu0 }
 0x209   : > { %893 = vrot.lane.b32.xlu0 %v3767_v39, %s4392_s2  ;;  %721 = vrot.lane.b32.xlu1 %v3767_v39, %s3575_s23  ;;  %v3780_v44 = vadd.f32 %v717_v42, %v643_v41 }
 0x20d   : > { %891 = vrot.lane.b32.xlu0 %v3767_v39, %s3576_s24 }
 0x27b   : > { %v722_v43 = vpop.permute.xlu1 %721  ;;  %v894_v54 = vpop.permute.xlu0 %893 }
 0x27c   : > { %3257 = vmatpush3.xpose.msk.msra.mxu1 %vm723_vm2, %v722_v43 }
 0x27d   : > { %3261 = vmatprep.subr.mxu1 %v3572_v11 }
 0x27f   : > { %3259 = vmatmul.mubr.msk.f32.vlgmr.msra.gmra.mxu1 %vm723_vm2, %v3767_v39  ;;  %v892_v56 = vpop.permute.xlu0 %891 }
 0x280   : > { %3262 = vmatpush3.msra.mxu1 %v3780_v44  ;;  %3263 = vmatprep.mubr.msk.f32.mxu1 %vm3573_vm1, %v3572_v11 }
 0x281   : > { %3266 = vmatprep.subr.mxu1 %v3572_v11 }
 0x33f   : > { %v794_v46 = vpop.f32.mrf.mxu1 }
 0x340   : > { %v798_v47 = vmul.f32 0.25, %v794_v46 }
 0x341   : > { %v3260_v48 = vpop.f32.mrf.mxu1 }
 0x342   : > { %v805_v49 = vadd.f32 %v3792_v45, %v798_v47 }
 0x344   : > { %v807_v50 = vsel %vm806_vm3, %v805_v49, -inf }
 0x345   : > { %808 = vmax.xlane.f32.xlu1 %v807_v50  ;;  %v1416_v50 = vld [vmem:[%s4374_s6 + $0x30] sm:$0xff] }
 0x356   : > { %981 = vrot.lane.b32.xlu1 %v3780_v44, %s3576_s24 }
 0x35a   : > { %1061 = vrot.lane.b32.xlu1 %v3767_v39, %s3577_s19 }
 0x35e   : > { %1059 = vrot.lane.b32.xlu1 %v3767_v39, %s4394_s1 }
 0x362   : > { %1148 = vrot.lane.b32.xlu1 %v3780_v44, %s4394_s1  ;;  %s4403_s1 = smov 80  }
 0x366   : > { %1226 = vrot.lane.b32.xlu1 %v3767_v39, %s4388_s20 }
 0x3ce   : > { %v809_v51 = vpop.xlane.xlu1 %808 }
 0x3cf   : > { %v810_v52 = vsub.f32 %v805_v49, %v809_v51  ;;  %v1417_v49 = vld [vmem:[%s4374_s6 + $0x38] sm:$0xff]  ;;  %v1415_v51 = vld [vmem:[%s4374_s6 + $0x28] sm:$0xff] }
 0x3d0   : > { %3297 = vmatpush3.msra.mxu0 %v1417_v49  ;;  %v1631_v49 = vld [vmem:[%s4380_s12 + $0x30] sm:$0xff] }
 0x3d1   : > { %v811_v53 = vmul.f32 1.442695, %v810_v52  ;;  %3298 = vmatprep.subr.mxu0 %v3572_v11  ;;  %v1414_v52 = vld [vmem:[%s4374_s6 + $0x20] sm:$0xff] }
 0x3d2   : > { %v982_v57 = vpop.permute.xlu1 %981  ;;  %3299 = vmatpush3.msra.mxu0 %v1416_v50  ;;  %v1630_v50 = vld [vmem:[%s4380_s12 + $0x28] sm:$0xff] }
 0x3d3   : > { %3520 = vpow2.f32 %v811_v53  ;;  %3300 = vmatprep.subr.mxu0 %v3572_v11  ;;  %v1413_v53 = vld [vmem:[%s4374_s6 + $0x18] sm:$0xff] }
 0x3d4   : > { %3301 = vmatpush3.msra.mxu0 %v1415_v51  ;;  %v1629_v51 = vld [vmem:[%s4380_s12 + $0x20] sm:$0xff] }
 0x3d5   : > { %3302 = vmatprep.subr.mxu0 %v3572_v11 }
 0x3d6   : > { %v1062_v4 = vpop.permute.xlu1 %1061  ;;  %3303 = vmatpush3.msra.mxu0 %v1414_v52  ;;  %v1628_v52 = vld [vmem:[%s4380_s12 + $0x18] sm:$0xff] }
 0x3d7   : > { %3304 = vmatprep.subr.mxu0 %v3572_v11 }
 0x3d8   : > { %3305 = vmatpush3.msra.mxu0 %v1413_v53  ;;  %v1627_v53 = vld [vmem:[%s4380_s12 + $0x10] sm:$0xff] }
 0x3d9   : > { %3306 = vmatprep.subr.mxu0 %v3572_v11 }
 0x3da   : > { %v1060_v5 = vpop.permute.xlu1 %1059 }
 0x3de   : > { %v1149_v7 = vpop.permute.xlu1 %1148 }
 0x3e0   : > { %v3806_v55 = vpop.eup %3520 }
 0x3e1   : > { %3264 = vmatmul.mubr.msk.f32.vlgmr.msra.gmra.mxu1 %vm806_vm3, %v3806_v55  ;;  %v813_v46 = vsel %vm806_vm3, %v3806_v55, 0.0  ;;  %v1411_v55 = vld [vmem:[%s4374_s6 + $0x8] sm:$0xff] }
 0x3e2   : > { %3267 = vmatpush3.xpose.msk.msra.mxu1 %vm723_vm2, %v894_v54  ;;  %3268 = vmatprep.mubr.msk.f32.mxu1 %vm3573_vm1, %v3572_v11  ;;  %v1227_v22 = vpop.permute.xlu1 %1226  ;;  %v1412_v54 = vld [vmem:[%s4374_s6 + $0x10] sm:$0xff] }
 0x3e3   : > { %3271 = vmatprep.subr.mxu1 %v3572_v11  ;;  %3307 = vmatpush3.msra.mxu0 %v1412_v54  ;;  %v1626_v54 = vld [vmem:[%s4380_s12 + $0x8] sm:$0xff] }
 0x3e4   : > { %3308 = vmatprep.subr.mxu0 %v3572_v11 }
 0x3e5   : > { %3269 = vmatmul.mubr.msk.f32.vlgmr.msra.gmra.mxu1 %vm723_vm2, %v892_v56  ;;  %3309 = vmatpush3.msra.mxu0 %v1411_v55  ;;  %v1625_v55 = vld [vmem:[%s4380_s12] sm:$0xff] }
 0x3e6   : > { %3272 = vmatpush3.msra.mxu1 %v982_v57  ;;  %3273 = vmatprep.mubr.msk.f32.mxu1 %vm3573_vm1, %v3572_v11  ;;  %v1410_v57 = vld [vmem:[%s4374_s6] sm:$0xff] }
 0x3e7   : > { %3276 = vmatprep.subr.mxu1 %v3572_v11  ;;  %3310 = vmatprep.subr.mxu0 %v3572_v11 }
 0x3e8   : > { %3311 = vmatpush3.msra.mxu0 %v1410_v57 }
 0x3e9   : > { %3334 = vmatprep.subr.mxu0 %v3572_v11 }
 0x4a1   : > { %v3818_v58 = vpop.f32.mrf.mxu1 }
 0x4a3   : > { %v3265_v59 = vpop.f32.mrf.mxu1 }
 0x4a5   : > { %v965_v60 = vpop.f32.mrf.mxu1 }
 0x4a6   : > { %v969_v61 = vmul.f32 0.25, %v965_v60 }
 0x4a7   : > { %v3270_v62 = vpop.f32.mrf.mxu1 }
 0x4a8   : > { %v970_v63 = vadd.f32 %v3792_v45, %v969_v61 }
 0x4aa   : > { %v971_v0 = vsel %vm806_vm3, %v970_v63, -inf }
 0x4ab   : > { %972 = vmax.xlane.f32.xlu0 %v971_v0 }
 0x534   : > { %v973_v1 = vpop.xlane.xlu0 %972 }
 0x535   : > { %v974_v2 = vsub.f32 %v970_v63, %v973_v1 }
 0x537   : > { %v975_v3 = vmul.f32 1.442695, %v974_v2 }
 0x539   : > { %3522 = vpow2.f32 %v975_v3 }
 0x546   : > { %v3523_v6 = vpop.eup %3522 }
 0x547   : > { %3274 = vmatmul.mubr.msk.f32.vlgmr.msra.gmra.mxu1 %vm806_vm3, %v3523_v6  ;;  %v977_v16 = vsel %vm806_vm3, %v3523_v6, 0.0 }
 0x548   : > { %3277 = vmatpush3.xpose.msk.msra.mxu1 %vm723_vm2, %v1062_v4  ;;  %3278 = vmatprep.mubr.msk.f32.mxu1 %vm3573_vm1, %v3572_v11 }
 0x549   : > { %3281 = vmatprep.subr.mxu1 %v3572_v11 }
 0x54b   : > { %3279 = vmatmul.mubr.msk.f32.vlgmr.msra.gmra.mxu1 %vm723_vm2, %v1060_v5 }
 0x54c   : > { %3282 = vmatpush3.msra.mxu1 %v1149_v7  ;;  %3283 = vmatprep.mubr.msk.f32.mxu1 %vm3573_vm1, %v3572_v11 }
 0x54d   : > { %3286 = vmatprep.subr.mxu1 %v3572_v11 }
 0x607   : > { %v1053_v8 = vpop.f32.mrf.mxu1 }
 0x609   : > { %v3275_v9 = vpop.f32.mrf.mxu1 }
 0x60b   : > { %v1133_v10 = vpop.f32.mrf.mxu1 }
 0x60c   : > { %v1137_v12 = vmul.f32 0.25, %v1133_v10 }
 0x60d   : > { %v3280_v13 = vpop.f32.mrf.mxu1 }
 0x60e   : > { %v1138_v14 = vadd.f32 %v3792_v45, %v1137_v12 }
 0x610   : > { %v1139_v15 = vsel %vm806_vm3, %v1138_v14, -inf }
 0x611   : > { %1140 = vmax.xlane.f32.xlu0 %v1139_v15 }
 0x627   : > { %1228 = vrot.lane.b32.xlu0 %v3767_v39, %s4390_s21 }
 0x62b   : > { %1315 = vrot.lane.b32.xlu0 %v3780_v44, %s4388_s20 }
 0x64a   : > { %978 = vadd.xlane.f32.xlu0 %v977_v16 }
 0x69a   : > { %v1141_v17 = vpop.xlane.xlu0 %1140 }
 0x69b   : > { %v1142_v18 = vsub.f32 %v1138_v14, %v1141_v17 }
 0x69d   : > { %v1143_v19 = vmul.f32 1.442695, %v1142_v18 }
 0x69e   : > { %v1229_v20 = vpop.permute.xlu0 %1228 }
 0x69f   : > { %3524 = vpow2.f32 %v1143_v19  ;;  %v1535_v19 = vld [vmem:[%s4378_s10 + $0x38] sm:$0xff] }
 0x6a2   : > { %v1316_v23 = vpop.permute.xlu0 %1315 }
 0x6ac   : > { %v3525_v21 = vpop.eup %3524 }
 0x6ad   : > { %3284 = vmatmul.mubr.msk.f32.vlgmr.msra.gmra.mxu1 %vm806_vm3, %v3525_v21  ;;  %v1145_v31 = vsel %vm806_vm3, %v3525_v21, 0.0  ;;  %v1532_v21 = vld [vmem:[%s4378_s10 + $0x20] sm:$0xff] }
 0x6ae   : > { %3287 = vmatpush3.xpose.msk.msra.mxu1 %vm723_vm2, %v1229_v20  ;;  %3288 = vmatprep.mubr.msk.f32.mxu1 %vm3573_vm1, %v3572_v11  ;;  %v1533_v20 = vld [vmem:[%s4378_s10 + $0x28] sm:$0xff] }
 0x6af   : > { %3291 = vmatprep.subr.mxu1 %v3572_v11 }
 0x6b1   : > { %3289 = vmatmul.mubr.msk.f32.vlgmr.msra.gmra.mxu1 %vm723_vm2, %v1227_v22  ;;  %v1531_v22 = vld [vmem:[%s4378_s10 + $0x18] sm:$0xff] }
 0x6b2   : > { %3292 = vmatpush3.msra.mxu1 %v1316_v23  ;;  %3293 = vmatprep.mubr.msk.f32.mxu1 %vm3573_vm1, %v3572_v11  ;;  %v1530_v23 = vld [vmem:[%s4378_s10 + $0x10] sm:$0xff] }
 0x6b3   : > { %3315 = vmatprep.subr.mxu1 %v3572_v11 }
 0x6d3   : > { %v979_v43 = vpop.xlane.xlu0 %978 }
 0x76d   : > { %v1220_v24 = vpop.f32.mrf.mxu1 }
 0x76f   : > { %v3285_v25 = vpop.f32.mrf.mxu1 }
 0x770   : > { %v1528_v25 = vld [vmem:[%s4378_s10] sm:$0xff] }
 0x771   : > { %v1300_v26 = vpop.f32.mrf.mxu1 }
 0x772   : > { %v1304_v27 = vmul.f32 0.25, %v1300_v26 }
 0x773   : > { %v3290_v28 = vpop.f32.mrf.mxu1 }
 0x774   : > { %v1305_v29 = vadd.f32 %v3792_v45, %v1304_v27 }
 0x776   : > { %v1306_v30 = vsel %vm806_vm3, %v1305_v29, -inf }
 0x777   : > { %1307 = vmax.xlane.f32.xlu1 %v1306_v30  ;;  %v3056_v30 = vld [vmem:[%s4376_s8] ss:$0 sm:$0xff] }
 0x77b   : > { %1146 = vadd.xlane.f32.xlu1 %v1145_v31 }
 0x800   : > { %v1308_v33 = vpop.xlane.xlu1 %1307 }
 0x801   : > { %v1309_v36 = vsub.f32 %v1305_v29, %v1308_v33  ;;  %v3057_v33 = vld [vmem:[%s4377_s9] ss:$0 sm:$0xff] }
 0x803   : > { %v1310_v37 = vmul.f32 1.442695, %v1309_v36 }
 0x804   : > { %v1147_v38 = vpop.xlane.xlu1 %1146 }
 0x805   : > { %3526 = vpow2.f32 %v1310_v37 }
 0x806   : > { %3528 = vrcp.f32 %v1147_v38  ;;  %v1640_v38 = vld [vmem:[%s4380_s12 + $0x78] sm:$0xff] }
 0x807   : > { %3530 = vrcp.f32 %v979_v43  ;;  %v1636_v43 = vld [vmem:[%s4380_s12 + $0x58] sm:$0xff] }
 0x812   : > { %v3527_v39 = vpop.eup %3526 }
 0x813   : > { %v3529_v41 = vpop.eup %3528  ;;  %3294 = vmatmul.mubr.msk.f32.vlgmr.msra.gmra.mxu1 %vm806_vm3, %v3527_v39  ;;  %v1312_v42 = vsel %vm806_vm3, %v3527_v39, 0.0  ;;  %v1639_v39 = vld [vmem:[%s4380_s12 + $0x70] sm:$0xff] }
 0x814   : > { %1313 = vadd.xlane.f32.xlu1 %v1312_v42  ;;  %v1225_v44 = vmul.f32 %v3529_v41, %v1220_v24  ;;  %3331 = vmatprep.mubr.msk.f32.mxu1 %vm3573_vm1, %v3572_v11  ;;  %v3531_v47 = vpop.eup %3530  ;;  %v1529_v24 = vld [vmem:[%s4378_s10 + $0x8] sm:$0xff]  ;;  %v1637_v42 = vld [vmem:[%s4380_s12 + $0x60] sm:$0xff] }
 0x815   : > { %v1058_v48 = vmul.f32 %v3531_v47, %v1053_v8  ;;  %3316 = vmatpush3.msra.mxu1 %v1535_v19  ;;  %v1638_v41 = vld [vmem:[%s4380_s12 + $0x68] sm:$0xff]  ;;  %v1633_v47 = vld [vmem:[%s4380_s12 + $0x40] sm:$0xff] }
 0x816   : > { %1398 = vrot.lane.b32.xlu0 %v1225_v44, %s3577_s19  ;;  %3317 = vmatprep.subr.mxu1 %v3572_v11  ;;  %v1635_v44 = vld [vmem:[%s4380_s12 + $0x50] sm:$0xff]  ;;  %v3076_v19 = vld [vmem:[%s4372_s4 + $0xe8] sm:$0xff] }
 0x818   : > { %814 = vadd.xlane.f32.xlu1 %v813_v46  ;;  %v1634_v46 = vld [vmem:[%s4380_s12 + $0x48] sm:$0xff] }
 0x829   : > { %1394 = vrot.lane.b32.xlu1 %v1058_v48, %s4390_s21  ;;  %v1632_v48 = vld [vmem:[%s4380_s12 + $0x38] sm:$0xff] }
 0x888   : > { %v1399_v4 = vpop.permute.xlu0 %1398 }
 0x89d   : > { %v1314_v56 = vpop.xlane.xlu1 %1313 }
 0x89e   : > { %3532 = vrcp.f32 %v1314_v56  ;;  %v3058_v56 = vld [vmem:[%s4379_s11] ss:$0 sm:$0xff] }
 0x8a1   : > { %v815_v63 = vpop.xlane.xlu1 %814 }
 0x8a2   : > { %3534 = vrcp.f32 %v815_v63 }
 0x8a5   : > { %v1395_v2 = vpop.permute.xlu1 %1394 }
 0x8ab   : > { %v3533_v59 = vpop.eup %3532 }
 0x8af   : > { %v3535_v0 = vpop.eup %3534 }
 0x8b0   : > { %v890_v1 = vmul.f32 %v3535_v0, %v3818_v58  ;;  %v3054_v58 = vld [vmem:[%s4375_s7] ss:$0 sm:$0xff] }
 0x8b2   : > { %v1405_v3 = vsel %vm723_vm2, %v890_v1, %v1395_v2 }
 0x8b3   : > { %v1407_v5 = vsel %vm1406_vm4, %v1405_v3, %v1399_v4 }
 0x8d3   : > { %v1387_v60 = vpop.f32.mrf.mxu1 }
 0x8d4   : > { %v1392_v61 = vmul.f32 %v3533_v59, %v1387_v60 }
 0x8d5   : > { %v3295_v62 = vpop.f32.mrf.mxu1 }
 0x8d6   : > { %1402 = vrot.lane.b32.xlu1 %v1392_v61, %s4392_s2  ;;  %s4402_s2 = smov 96  }
 0x948   : > { %v1403_v6 = vpop.permute.xlu1 %1402 }
 0x949   : > { %v1409_v7 = vsel %vm1408_vm5, %v1407_v5, %v1403_v6  ;;  %v3060_v6 = vld [vmem:[%s4381_s13] ss:$0 sm:$0xff] }
 0x94a   : > { %3313 = vmatmul.mubr.msk.f32.vlgmr.msra.gmra.mxu0 %vm588_vm0, %v1409_v7 }
 0x94b   : > { %3366 = vmatprep.mubr.msk.f32.mxu0 %vm3573_vm1, %v3572_v11  ;;  %3335 = vmatpush3.msra.mxu0 %v1640_v38 }
 0x94c   : > { %3336 = vmatprep.subr.mxu0 %v3572_v11 }
 0x94d   : > { %3337 = vmatpush3.msra.mxu0 %v1639_v39  ;;  %v3061_v39 = vld [vmem:[%s4382_s14] ss:$0 sm:$0xff] }
 0x94e   : > { %3338 = vmatprep.subr.mxu0 %v3572_v11 }
 0x94f   : > { %3339 = vmatpush3.msra.mxu0 %v1638_v41 }
 0x950   : > { %3340 = vmatprep.subr.mxu0 %v3572_v11 }
 0x951   : > { %3341 = vmatpush3.msra.mxu0 %v1637_v42  ;;  %v3062_v42 = vld [vmem:[%s4383_s15] ss:$0 sm:$0xff] }
 0x952   : > { %3342 = vmatprep.subr.mxu0 %v3572_v11 }
 0x953   : > { %3343 = vmatpush3.msra.mxu0 %v1636_v43 }
 0x954   : > { %3344 = vmatprep.subr.mxu0 %v3572_v11 }
 0x955   : > { %3345 = vmatpush3.msra.mxu0 %v1635_v44 }
 0x956   : > { %3346 = vmatprep.subr.mxu0 %v3572_v11 }
 0x957   : > { %3347 = vmatpush3.msra.mxu0 %v1634_v46  ;;  %v3079_v46 = vld [vmem:[%s4373_s5 + $0x2] sm:$0x3] }
 0x958   : > { %3348 = vmatprep.subr.mxu0 %v3572_v11 }
 0x959   : > { %3349 = vmatpush3.msra.mxu0 %v1633_v47  ;;  %v1771_v47 = vrot.slane %v3079_v46, %v638_v35 }
 0x95a   : > { %3350 = vmatprep.subr.mxu0 %v3572_v11 }
 0x95b   : > { %3351 = vmatpush3.msra.mxu0 %v1632_v48 }
 0x95c   : > { %3352 = vmatprep.subr.mxu0 %v3572_v11 }
 0x95d   : > { %3353 = vmatpush3.msra.mxu0 %v1631_v49 }
 0x95e   : > { %3354 = vmatprep.subr.mxu0 %v3572_v11 }
 0x95f   : > { %3355 = vmatpush3.msra.mxu0 %v1630_v50  ;;  %v1775_v50 = vrot.slane %v3079_v46, %v642_v40 }
 0x960   : > { %3356 = vmatprep.subr.mxu0 %v3572_v11 }
 0x961   : > { %3357 = vmatpush3.msra.mxu0 %v1629_v51 }
 0x962   : > { %3358 = vmatprep.subr.mxu0 %v3572_v11 }
 0x963   : > { %3359 = vmatpush3.msra.mxu0 %v1628_v52 }
 0x964   : > { %3360 = vmatprep.subr.mxu0 %v3572_v11 }
 0x965   : > { %3361 = vmatpush3.msra.mxu0 %v1627_v53 }
 0x966   : > { %3362 = vmatprep.subr.mxu0 %v3572_v11 }
 0x967   : > { %3363 = vmatpush3.msra.mxu0 %v1626_v54 }
 0x968   : > { %3364 = vmatprep.subr.mxu0 %v3572_v11 }
 0x969   : > { %3365 = vmatpush3.msra.mxu0 %v1625_v55 }
 0x96a   : > { %3389 = vmatprep.subr.mxu0 %v3572_v11 }
 0xa0a   : > { %v1494_v8 = vpop.f32.mrf.mxu0 }
 0xa0b   : > { %v1495_v9 = vadd.f32 %v3054_v58, %v1494_v8 }
 0xa0c   : > { %v3314_v10 = vpop.f32.mrf.mxu0 }
 0xa0d   : > { %v1498_v12 = vadd.f32 %v1495_v9, %v3751_v32  ;;  %v1534_v32 = vld [vmem:[%s4378_s10 + $0x30] sm:$0xff] }
 0xa0e   : > { %3318 = vmatpush3.msra.mxu1 %v1534_v32  ;;  %v3075_v32 = vld [vmem:[%s4372_s4 + $0xe0] sm:$0xff] }
 0xa0f   : > { %v1501_v13 = vsel %vm588_vm0, %v1498_v12, 0.0  ;;  %3319 = vmatprep.subr.mxu1 %v3572_v11 }
 0xa10   : > { %1502 = vadd.xlane.f32.xlu1 %v1501_v13  ;;  %3320 = vmatpush3.msra.mxu1 %v1533_v20  ;;  %v3074_v20 = vld [vmem:[%s4372_s4 + $0xd8] sm:$0xff] }
 0xa11   : > { %3321 = vmatprep.subr.mxu1 %v3572_v11 }
 0xa12   : > { %3322 = vmatpush3.msra.mxu1 %v1532_v21  ;;  %v3073_v21 = vld [vmem:[%s4372_s4 + $0xd0] sm:$0xff] }
 0xa13   : > { %3323 = vmatprep.subr.mxu1 %v3572_v11 }
 0xa14   : > { %3324 = vmatpush3.msra.mxu1 %v1531_v22  ;;  %v3072_v22 = vld [vmem:[%s4372_s4 + $0xc8] sm:$0xff] }
 0xa15   : > { %3325 = vmatprep.subr.mxu1 %v3572_v11 }
 0xa16   : > { %3326 = vmatpush3.msra.mxu1 %v1530_v23  ;;  %v3071_v23 = vld [vmem:[%s4372_s4 + $0xc0] sm:$0xff] }
 0xa17   : > { %3327 = vmatprep.subr.mxu1 %v3572_v11 }
 0xa18   : > { %3328 = vmatpush3.msra.mxu1 %v1529_v24  ;;  %v3070_v24 = vld [vmem:[%s4372_s4 + $0xb8] sm:$0xff] }
 0xa19   : > { %3329 = vmatprep.subr.mxu1 %v3572_v11 }
 0xa1a   : > { %3330 = vmatpush3.msra.mxu1 %v1528_v25  ;;  %v3069_v25 = vld [vmem:[%s4372_s4 + $0xb0] sm:$0xff] }
 0xa99   : > { %v1503_v14 = vpop.xlane.xlu1 %1502 }
 0xa9a   : > { %v1504_v15 = vmul.f32 0.015625, %v1503_v14 }
 0xa9c   : > { %v1505_v16 = vsub.f32 %v1498_v12, %v1504_v15 }
 0xa9e   : > { %v1506_v17 = vmul.f32 %v1505_v16, %v1505_v16 }
 0xaa0   : > { %v1507_v18 = vsel %vm588_vm0, %v1506_v17, 0.0  ;;  %v3078_v17 = vld [vmem:[%s4372_s4 + $0xf8] sm:$0xff] }
 0xaa1   : > { %1508 = vadd.xlane.f32.xlu0 %v1507_v18  ;;  %1797 = vmatprep.subr.mxu1 %v3078_v17  ;;  %v3077_v18 = vld [vmem:[%s4372_s4 + $0xf0] sm:$0xff] }
 0xb2a   : > { %v1509_v26 = vpop.xlane.xlu0 %1508 }
 0xb2b   : > { %v1510_v27 = vmul.f32 0.015625, %v1509_v26  ;;  %v3068_v26 = vld [vmem:[%s4372_s4 + $0xa8] sm:$0xff] }
 0xb2d   : > { %v1511_v28 = vadd.f32 1e-05, %v1510_v27  ;;  %v3067_v27 = vld [vmem:[%s4372_s4 + $0xa0] sm:$0xff] }
 0xb2f   : > { %3536 = vrsqrt.f32 %v1511_v28  ;;  %v3066_v28 = vld [vmem:[%s4372_s4 + $0x98] sm:$0xff] }
 0xb3c   : > { %v3537_v29 = vpop.eup %3536 }
 0xb3d   : > { %v1513_v31 = vmul.f32 %v3537_v29, %v1505_v16  ;;  %v3065_v29 = vld [vmem:[%s4372_s4 + $0x90] sm:$0xff] }
 0xb3f   : > { %v1520_v36 = vmul.f32 %v3056_v30, %v1513_v31  ;;  %v3064_v30 = vld [vmem:[%s4372_s4 + $0x88] sm:$0xff]  ;;  %v3063_v31 = vld [vmem:[%s4372_s4 + $0x80] sm:$0xff] }
 0xb41   : > { %v3941_v37 = vadd.f32 %v3057_v33, %v1520_v36 }
 0xb43   : > { %3332 = vmatmul.mubr.msk.f32.vlgmr.msra.gmra.mxu1 %vm588_vm0, %v3941_v37 }
 0xb44   : > { %1845 = vmatprep.mubr.f32.mxu1 %v3572_v11  ;;  %1798 = vmatpush1.msra.mxu1 %v3077_v18 }
 0xb45   : > { %1799 = vmatprep.subr.mxu1 %v3076_v19 }
 0xb46   : > { %1800 = vmatpush1.msra.mxu1 %v3075_v32 }
 0xb47   : > { %1801 = vmatprep.subr.mxu1 %v3074_v20 }
 0xb48   : > { %1802 = vmatpush1.msra.mxu1 %v3073_v21 }
 0xb49   : > { %1803 = vmatprep.subr.mxu1 %v3072_v22 }
 0xb4a   : > { %1804 = vmatpush1.msra.mxu1 %v3071_v23 }
 0xb4b   : > { %1805 = vmatprep.subr.mxu1 %v3070_v24 }
 0xb4c   : > { %1806 = vmatpush1.msra.mxu1 %v3069_v25 }
 0xb4d   : > { %1807 = vmatprep.subr.mxu1 %v3068_v26 }
 0xb4e   : > { %1808 = vmatpush1.msra.mxu1 %v3067_v27 }
 0xb4f   : > { %1809 = vmatprep.subr.mxu1 %v3066_v28 }
 0xb50   : > { %1810 = vmatpush1.msra.mxu1 %v3065_v29 }
 0xb51   : > { %1811 = vmatprep.subr.mxu1 %v3064_v30 }
 0xb52   : > { %1812 = vmatpush1.msra.mxu1 %v3063_v31 }
 0xb53   : > { %3369 = vmatprep.subr.mxu1 %v3572_v11 }
 0xc03   : > { %v1612_v57 = vpop.f32.mrf.mxu1 }
 0xc04   : > { %v1613_v59 = vadd.f32 %v3058_v56, %v1612_v57 }
 0xc05   : > { %v3333_v60 = vpop.f32.mrf.mxu1 }
 0xc06   : > { %v1616_v61 = vmul.f32 %v1613_v59, %v1613_v59 }
 0xc08   : > { %v1617_v62 = vmul.f32 %v1616_v61, %v1613_v59 }
 0xc0a   : > { %v1618_v63 = vmul.f32 0.044715, %v1617_v62 }
 0xc0c   : > { %v1619_v0 = vadd.f32 %v1618_v63, %v1613_v59 }
 0xc0e   : > { %v1620_v1 = vmul.f32 0.7978846, %v1619_v0 }
 0xc10   : > { %3538 = vtanh.f32 %v1620_v1 }
 0xc1d   : > { %v3539_v2 = vpop.eup %3538 }
 0xc1e   : > { %v1622_v3 = vadd.f32 1.0, %v3539_v2 }
 0xc20   : > { %v1623_v4 = vmul.f32 0.5, %v1622_v3 }
 0xc22   : > { %v1624_v5 = vmul.f32 %v1623_v4, %v1613_v59 }
 0xc24   : > { %3367 = vmatmul.mubr.f32.vlgmr.msra.gmra.mxu0 %v1624_v5 }
 0xc25   : > { %3391 = vmatprep.mubr.msk.f32.mxu0 %vm3573_vm1, %v3572_v11 }
 0xce4   : > { %v1714_v7 = vpop.f32.mrf.mxu0 }
 0xce5   : > { %v1715_v58 = vadd.f32 %v3060_v6, %v1714_v7 }
 0xce6   : > { %v3368_v8 = vpop.f32.mrf.mxu0 }
 0xce7   : > { %v1718_v9 = vadd.f32 %v1715_v58, %v3941_v37 }
 0xce9   : > { %v1721_v10 = vsel %vm588_vm0, %v1718_v9, 0.0 }
 0xcea   : > { %1722 = vadd.xlane.f32.xlu1 %v1721_v10 }
 0xd73   : > { %v1723_v12 = vpop.xlane.xlu1 %1722 }
 0xd74   : > { %v1724_v13 = vmul.f32 0.015625, %v1723_v12 }
 0xd76   : > { %v1725_v14 = vsub.f32 %v1718_v9, %v1724_v13 }
 0xd78   : > { %v1726_v15 = vmul.f32 %v1725_v14, %v1725_v14 }
 0xd7a   : > { %v1727_v16 = vsel %vm588_vm0, %v1726_v15, 0.0 }
 0xd7b   : > { %1728 = vadd.xlane.f32.xlu0 %v1727_v16 }
 0xe04   : > { %v1729_v33 = vpop.xlane.xlu0 %1728 }
 0xe05   : > { %v1730_v36 = vmul.f32 0.015625, %v1729_v33 }
 0xe07   : > { %v1731_v37 = vadd.f32 1e-05, %v1730_v36 }
 0xe09   : > { %3540 = vrsqrt.f32 %v1731_v37 }
 0xe16   : > { %v3541_v38 = vpop.eup %3540 }
 0xe17   : > { %v1733_v41 = vmul.f32 %v3541_v38, %v1725_v14 }
 0xe19   : > { %v1740_v43 = vmul.f32 %v3061_v39, %v1733_v41  ;;  %v3100_v41 = vld [vmem:[%s4374_s6 + $0x78] sm:$0xff] }
 0xe1b   : > { %v4076_v44 = vadd.f32 %v3062_v42, %v1740_v43  ;;  %v3099_v42 = vld [vmem:[%s4374_s6 + $0x70] sm:$0xff]  ;;  %v3098_v43 = vld [vmem:[%s4374_s6 + $0x68] sm:$0xff] }
 0xe1d   : > { %3080 = vmatmul.mubr.msk.f32.vlgmr.msra.gmra.mxu1 %vm588_vm0, %v4076_v44 }
 0xe1e   : > { %3371 = vmatprep.mubr.msk.f32.mxu1 %vm3573_vm1, %v3572_v11 }
 0xedd   : > { %v1847_v48 = vpop.f32.mrf.mxu1 }
 0xede   : > { %v1848_v49 = vadd.f32 %v1847_v48, %v1771_v47  ;;  %v3097_v48 = vld [vmem:[%s4374_s6 + $0x60] sm:$0xff] }
 0xedf   : > { %v1849_v51 = vpop.f32.mrf.mxu1 }
 0xee0   : > { %1853 = vrot.lane.b32.xlu1 %v1848_v49, %s3575_s23  ;;  %v4096_v35 = vadd.f32 %v1849_v51, %v1775_v50  ;;  %s4404_s23 = smov 48   ;;  %v3095_v51 = vld [vmem:[%s4374_s6 + $0x50] sm:$0xff] }
 0xee4   : > { %2015 = vrot.lane.b32.xlu1 %v1848_v49, %s3576_s24 }
 0xee8   : > { %2185 = vrot.lane.b32.xlu1 %v1848_v49, %s3577_s19 }
 0xeec   : > { %2183 = vrot.lane.b32.xlu1 %v1848_v49, %s4402_s2 }
 0xef0   : > { %2350 = vrot.lane.b32.xlu1 %v1848_v49, %s4403_s1 }
 0xf52   : > { %v1854_v52 = vpop.permute.xlu1 %1853 }
 0xf53   : > { %3370 = vmatpush3.xpose.msk.msra.mxu1 %vm723_vm2, %v1854_v52  ;;  %v3094_v52 = vld [vmem:[%s4374_s6 + $0x48] sm:$0xff] }
 0xf54   : > { %3374 = vmatprep.subr.mxu1 %v3572_v11 }
 0xf56   : > { %3372 = vmatmul.mubr.msk.f32.vlgmr.msra.gmra.mxu1 %vm723_vm2, %v1848_v49  ;;  %v2016_v53 = vpop.permute.xlu1 %2015 }
 0xf57   : > { %3375 = vmatpush3.msra.mxu1 %v4096_v35  ;;  %3376 = vmatprep.mubr.msk.f32.mxu1 %vm3573_vm1, %v3572_v11 }
 0xf58   : > { %3379 = vmatprep.subr.mxu1 %v3572_v11 }
 0xf5a   : > { %v2186_v34 = vpop.permute.xlu1 %2185 }
 0xf5b   : > { %3390 = vmatpush3.xpose.msk.msra.mxu0 %vm723_vm2, %v2186_v34 }
 0xf5c   : > { %3399 = vmatprep.subr.mxu0 %v3572_v11 }
 0xf5e   : > { %v2184_v40 = vpop.permute.xlu1 %2183 }
 0xf5f   : > { %3392 = vmatmul.mubr.msk.f32.vlgmr.msra.gmra.mxu0 %vm723_vm2, %v2184_v40 }
 0xf60   : > { %3401 = vmatprep.mubr.msk.f32.mxu0 %vm3573_vm1, %v3572_v11 }
 0xf62   : > { %v2351_v5 = vpop.permute.xlu1 %2350 }
0x1016   : > { %v1925_v54 = vpop.f32.mrf.mxu1 }
0x1017   : > { %v1929_v55 = vmul.f32 0.25, %v1925_v54 }
0x1018   : > { %v3373_v56 = vpop.f32.mrf.mxu1 }
0x1019   : > { %v1930_v57 = vadd.f32 %v3792_v45, %v1929_v55 }
0x101b   : > { %v1931_v59 = vsel %vm806_vm3, %v1930_v57, -inf }
0x101c   : > { %1932 = vmax.xlane.f32.xlu0 %v1931_v59 }
0x101f   : > { %v2257_v60 = vpop.f32.mrf.mxu0 }
0x1020   : > { %v2261_v61 = vmul.f32 0.25, %v2257_v60 }
0x1021   : > { %v3393_v62 = vpop.f32.mrf.mxu0 }
0x1022   : > { %v2262_v63 = vadd.f32 %v3792_v45, %v2261_v61 }
0x1024   : > { %v2263_v0 = vsel %vm806_vm3, %v2262_v63, -inf }
0x1025   : > { %2264 = vmax.xlane.f32.xlu1 %v2263_v0 }
0x1032   : > { %2017 = vrot.lane.b32.xlu0 %v1848_v49, %s4404_s23 }
0x1036   : > { %2352 = vrot.lane.b32.xlu0 %v1848_v49, %s4405_s26  ;;  %2272 = vrot.lane.b32.xlu1 %v4096_v35, %s4402_s2  ;;  %v3096_v49 = vld [vmem:[%s4374_s6 + $0x58] sm:$0xff] }
0x103a   : > { %2439 = vrot.lane.b32.xlu1 %v4096_v35, %s4403_s1 }
0x10a5   : > { %v1933_v1 = vpop.xlane.xlu0 %1932 }
0x10a6   : > { %v1934_v2 = vsub.f32 %v1930_v57, %v1933_v1 }
0x10a8   : > { %v1935_v3 = vmul.f32 1.442695, %v1934_v2 }
0x10a9   : > { %v2018_v4 = vpop.permute.xlu0 %2017 }
0x10aa   : > { %3542 = vpow2.f32 %v1935_v3 }
0x10ad   : > { %v2353_v6 = vpop.permute.xlu0 %2352 }
0x10ae   : > { %3400 = vmatpush3.xpose.msk.msra.mxu0 %vm723_vm2, %v2353_v6  ;;  %v2265_v7 = vpop.xlane.xlu1 %2264 }
0x10af   : > { %v2266_v58 = vsub.f32 %v2262_v63, %v2265_v7  ;;  %3409 = vmatprep.subr.mxu0 %v3572_v11 }
0x10b1   : > { %v2267_v8 = vmul.f32 1.442695, %v2266_v58  ;;  %3402 = vmatmul.mubr.msk.f32.vlgmr.msra.gmra.mxu0 %vm723_vm2, %v2351_v5 }
0x10b2   : > { %3425 = vmatprep.mubr.msk.f32.mxu0 %vm3573_vm1, %v3572_v11  ;;  %v2273_v31 = vpop.permute.xlu1 %2272  ;;  %3410 = vmatpush3.msra.mxu0 %v3100_v41  ;;  %v3131_v41 = vld [vmem:[%s4380_s12 + $0xe0] sm:$0xff] }
0x10b3   : > { %3544 = vpow2.f32 %v2267_v8  ;;  %3411 = vmatprep.subr.mxu0 %v3572_v11  ;;  %v3102_v8 = vld [vmem:[%s4375_s7 + $0x1] ss:$0 sm:$0xff] }
0x10b4   : > { %3412 = vmatpush3.msra.mxu0 %v3099_v42  ;;  %v3130_v42 = vld [vmem:[%s4380_s12 + $0xd8] sm:$0xff] }
0x10b5   : > { %3413 = vmatprep.subr.mxu0 %v3572_v11 }
0x10b6   : > { %v2440_v37 = vpop.permute.xlu1 %2439  ;;  %3414 = vmatpush3.msra.mxu0 %v3098_v43  ;;  %v3129_v43 = vld [vmem:[%s4380_s12 + $0xd0] sm:$0xff] }
0x10b7   : > { %v3543_v9 = vpop.eup %3542  ;;  %3415 = vmatprep.subr.mxu0 %v3572_v11 }
0x10b8   : > { %3377 = vmatmul.mubr.msk.f32.vlgmr.msra.gmra.mxu1 %vm806_vm3, %v3543_v9  ;;  %v1937_v39 = vsel %vm806_vm3, %v3543_v9, 0.0  ;;  %3416 = vmatpush3.msra.mxu0 %v3097_v48  ;;  %v3126_v48 = vld [vmem:[%s4380_s12 + $0xb8] sm:$0xff] }
0x10b9   : > { %3380 = vmatpush3.xpose.msk.msra.mxu1 %vm723_vm2, %v2018_v4  ;;  %3381 = vmatprep.mubr.msk.f32.mxu1 %vm3573_vm1, %v3572_v11 }
0x10ba   : > { %3384 = vmatprep.subr.mxu1 %v3572_v11  ;;  %3417 = vmatprep.subr.mxu0 %v3572_v11 }
0x10bb   : > { %3418 = vmatpush3.msra.mxu0 %v3096_v49  ;;  %v3125_v49 = vld [vmem:[%s4380_s12 + $0xb0] sm:$0xff] }
0x10bc   : > { %3382 = vmatmul.mubr.msk.f32.vlgmr.msra.gmra.mxu1 %vm723_vm2, %v2016_v53  ;;  %3419 = vmatprep.subr.mxu0 %v3572_v11 }
0x10bd   : > { %3386 = vmatprep.mubr.msk.f32.mxu1 %vm3573_vm1, %v3572_v11  ;;  %3420 = vmatpush3.msra.mxu0 %v3095_v51  ;;  %v3123_v51 = vld [vmem:[%s4380_s12 + $0xa0] sm:$0xff] }
0x10be   : > { %3421 = vmatprep.subr.mxu0 %v3572_v11 }
0x10bf   : > { %3422 = vmatpush3.msra.mxu0 %v3094_v52  ;;  %v3122_v52 = vld [vmem:[%s4380_s12 + $0x98] sm:$0xff] }
0x10c0   : > { %v3545_v10 = vpop.eup %3544  ;;  %3423 = vmatprep.subr.mxu0 %v3572_v11 }
0x10c1   : > { %v2269_v12 = vsel %vm806_vm3, %v3545_v10, 0.0 }
0x10c2   : > { %2270 = vadd.xlane.f32.xlu1 %v2269_v12 }
0x114b   : > { %v2271_v47 = vpop.xlane.xlu1 %2270 }
0x1171   : > { %v2424_v13 = vpop.f32.mrf.mxu0 }
0x1172   : > { %v2428_v14 = vmul.f32 0.25, %v2424_v13 }
0x1173   : > { %v3403_v15 = vpop.f32.mrf.mxu0 }
0x1174   : > { %v2429_v16 = vadd.f32 %v3792_v45, %v2428_v14 }
0x1176   : > { %v2430_v17 = vsel %vm806_vm3, %v2429_v16, -inf }
0x1177   : > { %2431 = vmax.xlane.f32.xlu0 %v2430_v17 }
0x1178   : > { %v4134_v18 = vpop.f32.mrf.mxu1 }
0x117a   : > { %v3378_v19 = vpop.f32.mrf.mxu1 }
0x117c   : > { %v2089_v32 = vpop.f32.mrf.mxu1 }
0x117d   : > { %v2093_v20 = vmul.f32 0.25, %v2089_v32  ;;  %v3115_v32 = vld [vmem:[%s4378_s10 + $0x78] sm:$0xff] }
0x117e   : > { %v3383_v21 = vpop.f32.mrf.mxu1 }
0x117f   : > { %v2094_v22 = vadd.f32 %v3792_v45, %v2093_v20  ;;  %v3113_v20 = vld [vmem:[%s4378_s10 + $0x68] sm:$0xff]  ;;  %v3112_v21 = vld [vmem:[%s4378_s10 + $0x60] sm:$0xff] }
0x1181   : > { %v2095_v23 = vsel %vm806_vm3, %v2094_v22, -inf }
0x1182   : > { %2096 = vmax.xlane.f32.xlu0 %v2095_v23  ;;  %v3110_v23 = vld [vmem:[%s4378_s10 + $0x50] sm:$0xff] }
0x1198   : > { %2105 = vrot.lane.b32.xlu0 %v4096_v35, %s3576_s24  ;;  %v3093_v35 = vld [vmem:[%s4374_s6 + $0x40] sm:$0xff] }
0x1199   : > { %3424 = vmatpush3.msra.mxu0 %v3093_v35  ;;  %v3121_v35 = vld [vmem:[%s4380_s12 + $0x90] sm:$0xff] }
0x119a   : > { %3447 = vmatprep.subr.mxu0 %v3572_v11 }
0x1200   : > { %v2432_v24 = vpop.xlane.xlu0 %2431 }
0x1201   : > { %v2433_v25 = vsub.f32 %v2429_v16, %v2432_v24  ;;  %v3109_v24 = vld [vmem:[%s4378_s10 + $0x48] sm:$0xff] }
0x1203   : > { %v2434_v28 = vmul.f32 1.442695, %v2433_v25  ;;  %v3108_v25 = vld [vmem:[%s4378_s10 + $0x40] sm:$0xff] }
0x120b   : > { %v2097_v26 = vpop.xlane.xlu0 %2096 }
0x120c   : > { %v2098_v27 = vsub.f32 %v2094_v22, %v2097_v26  ;;  %v3111_v22 = vld [vmem:[%s4378_s10 + $0x58] sm:$0xff] }
0x120e   : > { %v2099_v29 = vmul.f32 1.442695, %v2098_v27 }
0x120f   : > { %v2106_v30 = vpop.permute.xlu0 %2105 }
0x1210   : > { %3546 = vpow2.f32 %v2099_v29  ;;  %3385 = vmatpush3.msra.mxu1 %v2106_v30  ;;  %v3106_v30 = vld [vmem:[%s4376_s8 + $0x1] ss:$0 sm:$0xff] }
0x1211   : > { %3394 = vmatprep.subr.mxu1 %v3572_v11  ;;  %3548 = vpow2.f32 %v2434_v28 }
0x121d   : > { %v3547_v45 = vpop.eup %3546 }
0x121e   : > { %3387 = vmatmul.mubr.msk.f32.vlgmr.msra.gmra.mxu1 %vm806_vm3, %v3547_v45  ;;  %v2101_v33 = vsel %vm806_vm3, %v3547_v45, 0.0  ;;  %v3549_v36 = vpop.eup %3548  ;;  %v3107_v45 = vld [vmem:[%s4377_s9 + $0x1] ss:$0 sm:$0xff] }
0x121f   : > { %3395 = vmatpush3.msra.mxu1 %v2273_v31  ;;  %2102 = vadd.xlane.f32.xlu0 %v2101_v33  ;;  %v2436_v38 = vsel %vm806_vm3, %v3549_v36, 0.0 }
0x1220   : > { %3396 = vmatprep.mubr.msk.f32.mxu1 %vm3573_vm1, %v3572_v11  ;;  %3404 = vmatprep.subr.mxu1 %v3572_v11 }
0x1222   : > { %3397 = vmatmul.mubr.msk.f32.vlgmr.msra.gmra.mxu1 %vm806_vm3, %v3545_v10 }
0x1223   : > { %3405 = vmatpush3.msra.mxu1 %v2440_v37  ;;  %2437 = vadd.xlane.f32.xlu0 %v2436_v38  ;;  %v3134_v37 = vld [vmem:[%s4380_s12 + $0xf8] sm:$0xff]  ;;  %v3133_v38 = vld [vmem:[%s4380_s12 + $0xf0] sm:$0xff] }
0x1224   : > { %3406 = vmatprep.mubr.msk.f32.mxu1 %vm3573_vm1, %v3572_v11  ;;  %3428 = vmatprep.subr.mxu1 %v3572_v11 }
0x1226   : > { %3407 = vmatmul.mubr.msk.f32.vlgmr.msra.gmra.mxu1 %vm806_vm3, %v3549_v36 }
0x1227   : > { %1938 = vadd.xlane.f32.xlu0 %v1937_v39  ;;  %3444 = vmatprep.mubr.msk.f32.mxu1 %vm3573_vm1, %v3572_v11  ;;  %v3132_v39 = vld [vmem:[%s4380_s12 + $0xe8] sm:$0xff] }
0x1228   : > { %3429 = vmatpush3.msra.mxu1 %v3115_v32  ;;  %v2881_v32 = vld [vmem:[%s4384_s16 + $0x8] sm:$0xff] }
0x1229   : > { %3430 = vmatprep.subr.mxu1 %v3572_v11 }
0x12a8   : > { %v2103_v46 = vpop.xlane.xlu0 %2102 }
0x12a9   : > { %3550 = vrcp.f32 %v2103_v46  ;;  %v3128_v46 = vld [vmem:[%s4380_s12 + $0xc8] sm:$0xff] }
0x12aa   : > { %3552 = vrcp.f32 %v2271_v47  ;;  %v3127_v47 = vld [vmem:[%s4380_s12 + $0xc0] sm:$0xff] }
0x12ac   : > { %v2438_v50 = vpop.xlane.xlu0 %2437 }
0x12ad   : > { %3554 = vrcp.f32 %v2438_v50  ;;  %v3124_v50 = vld [vmem:[%s4380_s12 + $0xa8] sm:$0xff] }
0x12b0   : > { %v1939_v0 = vpop.xlane.xlu0 %1938 }
0x12b1   : > { %3556 = vrcp.f32 %v1939_v0 }
0x12b6   : > { %v3551_v53 = vpop.eup %3550 }
0x12b7   : > { %v3553_v55 = vpop.eup %3552 }
0x12ba   : > { %v3555_v60 = vpop.eup %3554 }
0x12be   : > { %v3557_v1 = vpop.eup %3556 }
0x12bf   : > { %v2014_v3 = vmul.f32 %v3557_v1, %v4134_v18 }
0x12de   : > { %v2177_v34 = vpop.f32.mrf.mxu1 }
0x12df   : > { %v2182_v40 = vmul.f32 %v3551_v53, %v2177_v34  ;;  %v3120_v53 = vld [vmem:[%s4380_s12 + $0x88] sm:$0xff]  ;;  %v3119_v34 = vld [vmem:[%s4380_s12 + $0x80] sm:$0xff] }
0x12e0   : > { %v3388_v54 = vpop.f32.mrf.mxu1 }
0x12e1   : > { %2518 = vrot.lane.b32.xlu1 %v2182_v40, %s4405_s26  ;;  %v3117_v40 = vld [vmem:[%s4379_s11 + $0x1] ss:$0 sm:$0xff]  ;;  %s4406_s26 = sshll.u32 %s4408_s28, 3 }
0x12e2   : > { %v2344_v56 = vpop.f32.mrf.mxu1  ;;  %s584_s2 = scalar_lea.vmem %s4386_s18, %s4406_s26 }
0x12e3   : > { %v2349_v57 = vmul.f32 %v3553_v55, %v2344_v56 }
0x12e4   : > { %v3398_v59 = vpop.f32.mrf.mxu1 }
0x12e5   : > { %2522 = vrot.lane.b32.xlu0 %v2349_v57, %s3577_s19 }
0x12e6   : > { %v2511_v61 = vpop.f32.mrf.mxu1 }
0x12e7   : > { %v2516_v62 = vmul.f32 %v3555_v60, %v2511_v61 }
0x12e8   : > { %v3408_v63 = vpop.f32.mrf.mxu1 }
0x12e9   : > { %2526 = vrot.lane.b32.xlu1 %v2516_v62, %s4404_s23 }
0x1353   : > { %v2519_v2 = vpop.permute.xlu1 %2518 }
0x1354   : > { %v2529_v5 = vsel %vm723_vm2, %v2014_v3, %v2519_v2  ;;  %v3136_v3 = vld [vmem:[%s4381_s13 + $0x1] ss:$0 sm:$0xff] }
0x1357   : > { %v2523_v4 = vpop.permute.xlu0 %2522 }
0x1358   : > { %v2530_v6 = vsel %vm1406_vm4, %v2529_v5, %v2523_v4 }
0x135b   : > { %v2527_v7 = vpop.permute.xlu1 %2526 }
0x135c   : > { %v2531_v58 = vsel %vm1408_vm5, %v2530_v6, %v2527_v7 }
0x135d   : > { %3426 = vmatmul.mubr.msk.f32.vlgmr.msra.gmra.mxu0 %vm588_vm0, %v2531_v58 }
0x135e   : > { %3479 = vmatprep.mubr.msk.f32.mxu0 %vm3573_vm1, %v3572_v11  ;;  %3448 = vmatpush3.msra.mxu0 %v3134_v37 }
0x135f   : > { %3449 = vmatprep.subr.mxu0 %v3572_v11 }
0x1360   : > { %3450 = vmatpush3.msra.mxu0 %v3133_v38 }
0x1361   : > { %3451 = vmatprep.subr.mxu0 %v3572_v11 }
0x1362   : > { %3452 = vmatpush3.msra.mxu0 %v3132_v39 }
0x1363   : > { %3453 = vmatprep.subr.mxu0 %v3572_v11 }
0x1364   : > { %3454 = vmatpush3.msra.mxu0 %v3131_v41 }
0x1365   : > { %3455 = vmatprep.subr.mxu0 %v3572_v11 }
0x1366   : > { %3456 = vmatpush3.msra.mxu0 %v3130_v42 }
0x1367   : > { %3457 = vmatprep.subr.mxu0 %v3572_v11 }
0x1368   : > { %3458 = vmatpush3.msra.mxu0 %v3129_v43 }
0x1369   : > { %3459 = vmatprep.subr.mxu0 %v3572_v11 }
0x136a   : > { %3460 = vmatpush3.msra.mxu0 %v3128_v46 }
0x136b   : > { %3461 = vmatprep.subr.mxu0 %v3572_v11 }
0x136c   : > { %3462 = vmatpush3.msra.mxu0 %v3127_v47 }
0x136d   : > { %3463 = vmatprep.subr.mxu0 %v3572_v11 }
0x136e   : > { %3464 = vmatpush3.msra.mxu0 %v3126_v48 }
0x136f   : > { %3465 = vmatprep.subr.mxu0 %v3572_v11 }
0x1370   : > { %3466 = vmatpush3.msra.mxu0 %v3125_v49 }
0x1371   : > { %3467 = vmatprep.subr.mxu0 %v3572_v11 }
0x1372   : > { %3468 = vmatpush3.msra.mxu0 %v3124_v50 }
0x1373   : > { %3469 = vmatprep.subr.mxu0 %v3572_v11 }
0x1374   : > { %3470 = vmatpush3.msra.mxu0 %v3123_v51 }
0x1375   : > { %3471 = vmatprep.subr.mxu0 %v3572_v11 }
0x1376   : > { %3472 = vmatpush3.msra.mxu0 %v3122_v52 }
0x1377   : > { %3473 = vmatprep.subr.mxu0 %v3572_v11 }
0x1378   : > { %3474 = vmatpush3.msra.mxu0 %v3121_v35 }
0x1379   : > { %3475 = vmatprep.subr.mxu0 %v3572_v11 }
0x137a   : > { %3476 = vmatpush3.msra.mxu0 %v3120_v53 }
0x137b   : > { %3477 = vmatprep.subr.mxu0 %v3572_v11 }
0x137c   : > { %3478 = vmatpush3.msra.mxu0 %v3119_v34 }
0x141d   : > { %v2618_v9 = vpop.f32.mrf.mxu0 }
0x141e   : > { %v2619_v10 = vadd.f32 %v3102_v8, %v2618_v9 }
0x141f   : > { %v3427_v12 = vpop.f32.mrf.mxu0 }
0x1420   : > { %v2622_v13 = vadd.f32 %v2619_v10, %v4076_v44  ;;  %v3114_v44 = vld [vmem:[%s4378_s10 + $0x70] sm:$0xff] }
0x1421   : > { %3431 = vmatpush3.msra.mxu1 %v3114_v44  ;;  %v2880_v44 = vld [vmem:[%s4384_s16] sm:$0xff] }
0x1422   : > { %v2627_v14 = vsel %vm588_vm0, %v2622_v13, 0.0  ;;  %3432 = vmatprep.subr.mxu1 %v3572_v11 }
0x1423   : > { %2628 = vadd.xlane.f32.xlu1 %v2627_v14  ;;  %3433 = vmatpush3.msra.mxu1 %v3113_v20  ;;  %v2887_v14 = vld [vmem:[%s4384_s16 + $0x38] sm:$0xff] }
0x1424   : > { %3434 = vmatprep.subr.mxu1 %v3572_v11 }
0x1425   : > { %3435 = vmatpush3.msra.mxu1 %v3112_v21 }
0x1426   : > { %3436 = vmatprep.subr.mxu1 %v3572_v11 }
0x1427   : > { %3437 = vmatpush3.msra.mxu1 %v3111_v22 }
0x1428   : > { %3438 = vmatprep.subr.mxu1 %v3572_v11 }
0x1429   : > { %3439 = vmatpush3.msra.mxu1 %v3110_v23 }
0x142a   : > { %3440 = vmatprep.subr.mxu1 %v3572_v11 }
0x142b   : > { %3441 = vmatpush3.msra.mxu1 %v3109_v24  ;;  %v3139_v24 = vld [vmem:[%s4382_s14 + $0x1] ss:$0 sm:$0xff] }
0x142c   : > { %3442 = vmatprep.subr.mxu1 %v3572_v11 }
0x142d   : > { %3443 = vmatpush3.msra.mxu1 %v3108_v25 }
0x142e   : > { %3482 = vmatprep.subr.mxu1 %v3572_v11 }
0x14ac   : > { %v2629_v15 = vpop.xlane.xlu1 %2628 }
0x14ad   : > { %v2630_v16 = vmul.f32 0.015625, %v2629_v15  ;;  %v2886_v15 = vld [vmem:[%s4384_s16 + $0x30] sm:$0xff] }
0x14af   : > { %v2631_v17 = vsub.f32 %v2622_v13, %v2630_v16  ;;  %v2885_v16 = vld [vmem:[%s4384_s16 + $0x28] sm:$0xff] }
0x14b1   : > { %v2632_v18 = vmul.f32 %v2631_v17, %v2631_v17 }
0x14b3   : > { %v2633_v19 = vsel %vm588_vm0, %v2632_v18, 0.0  ;;  %v2883_v18 = vld [vmem:[%s4384_s16 + $0x18] sm:$0xff] }
0x14b4   : > { %2634 = vadd.xlane.f32.xlu0 %v2633_v19  ;;  %v2882_v19 = vld [vmem:[%s4384_s16 + $0x10] sm:$0xff] }
0x153d   : > { %v2635_v26 = vpop.xlane.xlu0 %2634 }
0x153e   : > { %v2636_v27 = vmul.f32 0.015625, %v2635_v26  ;;  %v3140_v26 = vld [vmem:[%s4383_s15 + $0x1] ss:$0 sm:$0xff] }
0x1540   : > { %v2637_v28 = vadd.f32 1e-05, %v2636_v27 }
0x1542   : > { %3558 = vrsqrt.f32 %v2637_v28 }
0x154f   : > { %v3559_v29 = vpop.eup %3558 }
0x1550   : > { %v2639_v31 = vmul.f32 %v3559_v29, %v2631_v17  ;;  %v2884_v17 = vld [vmem:[%s4384_s16 + $0x20] sm:$0xff] }
0x1552   : > { %v2646_v33 = vmul.f32 %v3106_v30, %v2639_v31 }
0x1554   : > { %v4241_v36 = vadd.f32 %v3107_v45, %v2646_v33 }
0x1556   : > { %3445 = vmatmul.mubr.msk.f32.vlgmr.msra.gmra.mxu1 %vm588_vm0, %v4241_v36 }
0x1557   : > { %3498 = vmatprep.mubr.msk.f32.mxu1 %vm3573_vm1, %v3572_v11  ;;  %3483 = vmatpush3.msra.mxu1 %v2887_v14 }
0x1558   : > { %3484 = vmatprep.subr.mxu1 %v3572_v11 }
0x1559   : > { %3485 = vmatpush3.msra.mxu1 %v2886_v15 }
0x155a   : > { %3486 = vmatprep.subr.mxu1 %v3572_v11 }
0x155b   : > { %3487 = vmatpush3.msra.mxu1 %v2885_v16 }
0x155c   : > { %3488 = vmatprep.subr.mxu1 %v3572_v11 }
0x155d   : > { %3489 = vmatpush3.msra.mxu1 %v2884_v17 }
0x155e   : > { %3490 = vmatprep.subr.mxu1 %v3572_v11 }
0x155f   : > { %3491 = vmatpush3.msra.mxu1 %v2883_v18 }
0x1560   : > { %3492 = vmatprep.subr.mxu1 %v3572_v11 }
0x1561   : > { %3493 = vmatpush3.msra.mxu1 %v2882_v19 }
0x1562   : > { %3494 = vmatprep.subr.mxu1 %v3572_v11 }
0x1563   : > { %3495 = vmatpush3.msra.mxu1 %v2881_v32 }
0x1564   : > { %3496 = vmatprep.subr.mxu1 %v3572_v11  ;;  %v3141_v11 = vld [vmem:[%s4385_s17] ss:$0 sm:$0xff] }
0x1565   : > { %3497 = vmatpush3.msra.mxu1 %v2880_v44 }
0x1616   : > { %v2740_v54 = vpop.f32.mrf.mxu1 }
0x1617   : > { %v2741_v55 = vadd.f32 %v3117_v40, %v2740_v54 }
0x1618   : > { %v3446_v56 = vpop.f32.mrf.mxu1 }
0x1619   : > { %v2744_v57 = vmul.f32 %v2741_v55, %v2741_v55 }
0x161b   : > { %v2745_v59 = vmul.f32 %v2744_v57, %v2741_v55 }
0x161d   : > { %v2746_v60 = vmul.f32 0.044715, %v2745_v59 }
0x161f   : > { %v2747_v61 = vadd.f32 %v2746_v60, %v2741_v55 }
0x1621   : > { %v2748_v62 = vmul.f32 0.7978846, %v2747_v61 }
0x1623   : > { %3560 = vtanh.f32 %v2748_v62 }
0x1630   : > { %v3561_v63 = vpop.eup %3560 }
0x1631   : > { %v2750_v0 = vadd.f32 1.0, %v3561_v63 }
0x1633   : > { %v2751_v1 = vmul.f32 0.5, %v2750_v0 }
0x1635   : > { %v2752_v2 = vmul.f32 %v2751_v1, %v2741_v55 }
0x1637   : > { %3480 = vmatmul.mubr.f32.vlgmr.msra.gmra.mxu0 %v2752_v2 }
0x16f7   : > { %v2844_v4 = vpop.f32.mrf.mxu0 }
0x16f8   : > { %v2845_v5 = vadd.f32 %v3136_v3, %v2844_v4 }
0x16f9   : > { %v3481_v6 = vpop.f32.mrf.mxu0 }
0x16fa   : > { %v2848_v7 = vadd.f32 %v2845_v5, %v4241_v36 }
0x16fc   : > { %v2853_v58 = vsel %vm588_vm0, %v2848_v7, 0.0 }
0x16fd   : > { %2854 = vadd.xlane.f32.xlu0 %v2853_v58 }
0x1786   : > { %v2855_v8 = vpop.xlane.xlu0 %2854 }
0x1787   : > { %v2856_v9 = vmul.f32 0.015625, %v2855_v8 }
0x1789   : > { %v2857_v10 = vsub.f32 %v2848_v7, %v2856_v9 }
0x178b   : > { %v2858_v12 = vmul.f32 %v2857_v10, %v2857_v10 }
0x178d   : > { %v2859_v13 = vsel %vm588_vm0, %v2858_v12, 0.0 }
0x178e   : > { %2860 = vadd.xlane.f32.xlu1 %v2859_v13 }
0x1817   : > { %v2861_v20 = vpop.xlane.xlu1 %2860 }
0x1818   : > { %v2862_v21 = vmul.f32 0.015625, %v2861_v20 }
0x181a   : > { %v2863_v22 = vadd.f32 1e-05, %v2862_v21 }
0x181c   : > { %3562 = vrsqrt.f32 %v2863_v22 }
0x1829   : > { %v3563_v23 = vpop.eup %3562 }
0x182a   : > { %v2865_v25 = vmul.f32 %v3563_v23, %v2857_v10 }
0x182c   : > { %v2872_v27 = vmul.f32 %v3139_v24, %v2865_v25 }
0x182e   : > { %v2879_v28 = vadd.f32 %v3140_v26, %v2872_v27 }
0x1830   : > { %3499 = vmatmul.mubr.msk.f32.vlgmr.msra.gmra.mxu1 %vm588_vm0, %v2879_v28 }
0x18f0   : > { %v2964_v29 = vpop.f32.mrf.mxu1 }
0x18f1   : > { %v2965_v30 = vadd.f32 %v3141_v11, %v2964_v29 }
0x18f2   : > { %v3500_v31 = vpop.f32.mrf.mxu1 }
0x18f3   : > { %2968 = vst [vmem:[%s584_s2] sm:$0xff] %v2965_v30 }
0x18f4 PF: > { %s28_s27 = sadd.s32 1, %s3570_s27  }
0x18f5   : > { %p25_p4 = scmp.ge.s32.totalorder %s28_s27, 4  }
0x18f7   :  { %27 = sbr.rel (!%p25_p4) target bundleno = 4 (0x4), region = 137 }

</bundles_post_ra>
